<compile_context>
chip_gen: v7x
topology: tpu7x:2x2x1
jax: 0.10.0
libtpu: 0.0.40
codegen_flags: <defaults>
</compile_context>

<pallas_src>
import jax
import jax.numpy as jnp
import numpy as np
from jax.experimental import pallas as pl
from jax.experimental.pallas import tpu as pltpu

NEG_SLOPE = 0.01  # nn.LeakyReLU default negative_slope


def _leaky(x):
    return jnp.where(x >= 0.0, x, NEG_SLOPE * x)


# ---------------------------------------------------------------------------
# The fused Pallas kernel (one grid step = one chunk of `nb` images)
# ---------------------------------------------------------------------------
# Activation layout per conv stage (bf16 at matmul inputs, f32 elementwise):
#   P : (nb * (H+2), W * C_in)   zero boundary rows per image, NO lane padding,
#                                data row n*(H+2)+1+y, lane x*C_in + ci
#   A = sum_dy (U_dy @ P) @ M[dy]            (banded conv; 256 lanes = 2 pool cols)
#   B = leaky(max(A[:, :128], A[:, 128:]) + bias)
#   P_next = max(S0 @ B, S1 @ B)             (height pool + placement into the next
#                                             stage's padded-row layout)
def _fused_cnn_kernel(
    x_ref,
    u1_ref, m1_ref, cb1_ref, s1_ref,
    u2_ref, m2_ref, cb2_ref, s2_ref,
    u3_ref, m3_ref, cb3_ref, s3_ref,
    w1_ref, sel_ref, b1_ref,
    w2_ref, b2_ref, w3_ref, b3_ref,
    out_ref,
):
    f32 = jnp.float32
    bf16 = jnp.bfloat16

    def stage(p, u_ref, m_ref, cb_ref, s_ref):
        """conv3x3 + bias + LeakyReLU + 2x2 max-pool for one stage."""
        # Row shifts dy = 1, 2 via 0/1 selection matmuls (exact in bf16).
        sh0 = p
        sh1 = jnp.dot(u_ref[0], p, preferred_element_type=f32).astype(bf16)
        sh2 = jnp.dot(u_ref[1], p, preferred_element_type=f32).astype(bf16)
        # Banded conv: both pool-column branches share one 256-lane matmul per dy.
        a = (jnp.dot(sh0, m_ref[0], preferred_element_type=f32)
             + jnp.dot(sh1, m_ref[1], preferred_element_type=f32)
             + jnp.dot(sh2, m_ref[2], preferred_element_type=f32))
        lb = m_ref.shape[-1] // 2            # = 128 for every stage
        # max-pool commutes with the shared per-channel bias and monotonic LeakyReLU.
        pre = jnp.maximum(a[:, :lb], a[:, lb:]) + cb_ref[...]
        b = _leaky(pre).astype(bf16)
        # Height-direction pool half + placement into next stage's padded rows
        # (padding rows are exact zeros because their S rows are all-zero).
        pooled = jnp.maximum(
            jnp.dot(s_ref[0], b, preferred_element_type=f32),
            jnp.dot(s_ref[1], b, preferred_element_type=f32))
        return pooled.astype(bf16)

    p = x_ref[...].astype(bf16)                       # (nb*34,  96)
    p = stage(p, u1_ref, m1_ref, cb1_ref, s1_ref)     # (nb*18, 128)
    p = stage(p, u2_ref, m2_ref, cb2_ref, s2_ref)     # (nb*10, 128)
    g = stage(p, u3_ref, m3_ref, cb3_ref, s3_ref)     # (nb*4,  128)

    # FC1: torch.flatten(NCHW) ordering is baked into w1 at prepack time.  Each
    # ho-row slab of g is gathered with a tiny 0/1 matmul and contracted.
    acc = None
    for ho in range(4):
        rows = jnp.dot(sel_ref[ho], g, preferred_element_type=f32).astype(bf16)
        term = jnp.dot(rows, w1_ref[ho], preferred_element_type=f32)
        acc = term if acc is None else acc + term
    h1 = _leaky(acc + b1_ref[...]).astype(bf16)
    h2 = _leaky(jnp.dot(h1, w2_ref[...], preferred_element_type=f32)
                + b2_ref[...]).astype(bf16)
    logits = jnp.dot(h2, w3_ref[...], preferred_element_type=f32) + b3_ref[...]

    # Softmax (axis=1, f32).  Approx reciprocal (EUP slot) + one Newton step keeps
    # the row sums within ~1e-7 of 1 (the module asserts 1e-3).
    m = jnp.max(logits, axis=1, keepdims=True)
    e = jnp.exp(logits - m)
    s = jnp.sum(e, axis=1, keepdims=True)
    r = pl.reciprocal(s, approx=True)
    r = r * (2.0 - s * r)
    out_ref[...] = e * r


# ---------------------------------------------------------------------------
# One-time host-side weight pre-packing (bakes im2col, padding, pooling geometry
# and torch.flatten ordering into bf16 matmul operands; f32 biases).
# ---------------------------------------------------------------------------
def prepack(params, chunk_batch):
    nb = int(chunk_batch)

    def mat(a):   # MXU operand -> bf16 (0/1 matrices are exact in bf16)
        return jnp.asarray(np.asarray(a, np.float32), jnp.bfloat16)

    def vec(a):   # elementwise operand -> f32
        return jnp.asarray(np.asarray(a, np.float32), jnp.float32)

    packed = []
    stage_defs = [
        ("conv1", 32, 3, 8, False),
        ("conv2", 16, 8, 16, False),
        ("conv3", 8, 16, 32, True),
    ]
    for name, h_in, c_in, c_out, last in stage_defs:
        w = np.asarray(params[f"{name}_w"], np.float32)       # (c_out, c_in, 3, 3)
        bvec = np.asarray(params[f"{name}_b"], np.float32)    # (c_out,)
        H = W = h_in
        Ho = Wo = h_in // 2
        RP_in = H + 2
        R_in = nb * RP_in
        L_in = W * c_in
        LB = Wo * c_out                                       # exactly 128

        # Row-shift matrices (dy = 1, 2): (U_dy @ P)[r] = P[r + dy] (zero past end).
        U = np.stack([np.eye(R_in, k=1, dtype=np.float32),
                      np.eye(R_in, k=2, dtype=np.float32)], axis=0)

        # Banded conv matrices with BOTH pool-column branches in the lane dim:
        #   M[dy, x_in*c_in + ci, px*LB + wo*c_out + co] = w[co, ci, dy, dx]
        # where x_in = 2*wo + px + dx - 1; out-of-range taps (W padding) are dropped.
        M = np.zeros((3, L_in, 2 * LB), np.float32)
        for dy in range(3):
            for px in range(2):
                for dx in range(3):
                    blk = w[:, :, dy, dx].T                   # (c_in, c_out)
                    for wo in range(Wo):
                        x_in = 2 * wo + px + dx - 1
                        if 0 <= x_in < W:
                            li = x_in * c_in
                            lo = px * LB + wo * c_out
                            M[dy, li:li + c_in, lo:lo + c_out] = blk

        # Bias tiled over the 128 output lanes.
        bias = np.tile(bvec, Wo).reshape(1, LB)

        # Row selection: pick conv rows y = 2*ho + py and place them at the next
        # stage's padded row (pad rows stay exactly zero).
        if last:
            R_next = nb * Ho
            def dst(n, ho):
                return n * Ho + ho
        else:
            RP_next = Ho + 2
            R_next = nb * RP_next
            def dst(n, ho):
                return n * RP_next + 1 + ho
        S = np.zeros((2, R_next, R_in), np.float32)
        for py in range(2):
            for n in range(nb):
                for ho in range(Ho):
                    S[py, dst(n, ho), n * RP_in + 2 * ho + py] = 1.0

        packed += [mat(U), mat(M), vec(bias), mat(S)]

    # FC head.  fc1 weight reordered so contracting against the kernel's
    # (wo*32 + co) lane layout reproduces torch.flatten(x_NCHW, 1) exactly.
    W1 = np.asarray(params["fc1_w"], np.float32)              # (256, 512), f = co*16+ho*4+wo
    W1h = np.transpose(W1.reshape(256, 32, 4, 4), (2, 3, 1, 0)).reshape(4, 128, 256)
    Sel = np.zeros((4, nb, nb * 4), np.float32)
    for ho in range(4):
        for n in range(nb):
            Sel[ho, n, n * 4 + ho] = 1.0
    packed += [
        mat(W1h),
        mat(Sel),
        vec(np.asarray(params["fc1_b"], np.float32).reshape(1, -1)),
        mat(np.asarray(params["fc2_w"], np.float32).T),        # (256, 128)
        vec(np.asarray(params["fc2_b"], np.float32).reshape(1, -1)),
        mat(np.asarray(params["fc3_w"], np.float32).T),        # (128, num_classes)
        vec(np.asarray(params["fc3_b"], np.float32).reshape(1, -1)),
    ]
    return tuple(packed)


_SEL_INDEX = 13   # position of Sel in the packed tuple (encodes the chunk batch)


def _resident_spec(arr):
    """Full-array block with a constant index map -> stays VMEM-resident across
    grid steps (no re-DMA of weights per chunk)."""
    nd = arr.ndim
    return pl.BlockSpec(arr.shape, lambda i, _nd=nd: (0,) * _nd)


# ---------------------------------------------------------------------------
# Forward pass (mirrors YourCNN.forward) -- ONE pallas_call with a chunk grid
# ---------------------------------------------------------------------------
def your_cnn_forward(x_nchw, packed):
    n = x_nchw.shape[0]
    assert x_nchw.shape[1:] == (3, 32, 32), f"Wrong input shape {x_nchw.shape}"
    nb = packed[_SEL_INDEX].shape[1]          # per-chunk batch baked into prepack()
    assert n % nb == 0, f"batch {n} must be a multiple of the prepacked chunk {nb}"
    nchunks = n // nb
    nc = packed[-1].shape[1]

    # Layout plumbing (tiny fused XLA op, ~12 KB/img): NCHW -> NHWC, zero-pad H by 1
    # (W padding is folded into the banded conv weights), flatten to the kernel's
    # (chunks, nb*(H+2), W*C) layout.
    x = jnp.transpose(x_nchw.astype(jnp.float32), (0, 2, 3, 1))   # (n, 32, 32, 3)
    x = jnp.pad(x, ((0, 0), (1, 1), (0, 0), (0, 0)))              # (n, 34, 32, 3)
    x = x.reshape(nchunks, nb * 34, 32 * 3)

    in_specs = [pl.BlockSpec((None, nb * 34, 32 * 3), lambda i: (i, 0, 0))]
    in_specs += [_resident_spec(a) for a in packed]

    out = pl.pallas_call(
        _fused_cnn_kernel,
        out_shape=jax.ShapeDtypeStruct((nchunks, nb, nc), jnp.float32),
        grid=(nchunks,),
        in_specs=in_specs,
        out_specs=pl.BlockSpec((None, nb, nc), lambda i: (i, 0, 0)),
        compiler_params=pltpu.CompilerParams(
            dimension_semantics=("parallel",)),   # v7x: chunks split across 2 TCs
    )(x, *packed)
    return out.reshape(n, nc)


# ---------------------------------------------------------------------------
# Parameter init (deterministic, PyTorch-default-like uniform(-1/sqrt(fan_in)))
# ---------------------------------------------------------------------------
def init_params(key, num_classes=10):
    def uinit(k, shape, fan_in):
        bound = 1.0 / np.sqrt(float(fan_in))
        return jax.random.uniform(k, shape, jnp.float32, -bound, bound)

    ks = jax.random.split(key, 12)
    return {
        "conv1_w": uinit(ks[0], (8, 3, 3, 3), 3 * 9),
        "conv1_b": uinit(ks[1], (8,), 3 * 9),
        "conv2_w": uinit(ks[2], (16, 8, 3, 3), 8 * 9),
        "conv2_b": uinit(ks[3], (16,), 8 * 9),
        "conv3_w": uinit(ks[4], (32, 16, 3, 3), 16 * 9),
        "conv3_b": uinit(ks[5], (32,), 16 * 9),
        "fc1_w": uinit(ks[6], (256, 32 * 4 * 4), 32 * 4 * 4),
        "fc1_b": uinit(ks[7], (256,), 32 * 4 * 4),
        "fc2_w": uinit(ks[8], (128, 256), 256),
        "fc2_b": uinit(ks[9], (128,), 256),
        "fc3_w": uinit(ks[10], (num_classes, 128), 128),
        "fc3_b": uinit(ks[11], (num_classes,), 128),
    }


# ---------------------------------------------------------------------------
# Pure-JAX reference (non-Pallas) used as an in-script correctness check
# ---------------------------------------------------------------------------
def reference_forward(x_nchw, params):
    hi = jax.lax.Precision.HIGHEST
    x = jnp.transpose(x_nchw.astype(jnp.float32), (0, 2, 3, 1))

    def conv_lrelu_pool(x, w, bvec):
        n, h, wd, cin = x.shape
        cout = w.shape[0]
        xp = jnp.pad(x, ((0, 0), (1, 1), (1, 1), (0, 0)))
        patches = jnp.concatenate(
            [xp[:, dy:dy + h, dx:dx + wd, :] for dy in range(3) for dx in range(3)],
            axis=-1)
        wmat = jnp.transpose(w, (2, 3, 1, 0)).reshape(9 * cin, cout)
        y = jnp.einsum("nhwk,kc->nhwc", patches, wmat, precision=hi) + bvec
        y = _leaky(y)
        return y.reshape(n, h // 2, 2, wd // 2, 2, cout).max(axis=(2, 4))

    x = conv_lrelu_pool(x, params["conv1_w"], params["conv1_b"])
    x = conv_lrelu_pool(x, params["conv2_w"], params["conv2_b"])
    x = conv_lrelu_pool(x, params["conv3_w"], params["conv3_b"])
    x = jnp.transpose(x, (0, 3, 1, 2)).reshape(x.shape[0], -1)   # torch.flatten order

    def lin(h, w, bvec):
        return jnp.dot(h, w.T, precision=hi) + bvec

    x = _leaky(lin(x, params["fc1_w"], params["fc1_b"]))
    x = _leaky(lin(x, params["fc2_w"], params["fc2_b"]))
    return jax.nn.softmax(lin(x, params["fc3_w"], params["fc3_b"]), axis=1)


if __name__ == "__main__":
    key = jax.random.PRNGKey(0)
    k_x, k_p = jax.random.split(key)

    batch, chunk = 4, 2                     # grid of 2 chunks, weights resident
    x = jax.random.normal(k_x, (batch, 3, 32, 32), dtype=jnp.float32)
    params = init_params(k_p, num_classes=10)
    packed = prepack(params, chunk)         # one-time bf16 weight pre-packing

    fwd = jax.jit(your_cnn_forward)
    out = jax.block_until_ready(fwd(x, packed))

    # Checks mirroring YourCNN.forward's asserts.
    assert out.shape == (batch, 10), f"bad output shape {out.shape}"
    row_sums = jnp.sum(out, axis=1)
    assert bool(jnp.all(row_sums < 1.001)) and bool(jnp.all(row_sums > 0.999)), \
        "Softmax not working"

    # Cross-check the fused bf16 kernel against a plain-JAX f32 reference.
    ref = jax.block_until_ready(reference_forward(x, params))
    max_err = float(jnp.max(jnp.abs(out - ref)))
    assert max_err < 2e-2, f"Pallas output deviates from reference (max abs err {max_err})"

    print("KERNEL_OK")
</pallas_src>

<mosaic_0001>
module attributes {stable_mosaic.version = 11 : i64} {
  func.func @_fused_cnn_kernel(%arg0: i32, %arg1: memref<1x68x96xf32, #tpu.memory_space<vmem>>, %arg2: memref<2x68x68xbf16, #tpu.memory_space<vmem>>, %arg3: memref<3x96x256xbf16, #tpu.memory_space<vmem>>, %arg4: memref<1x128xf32, #tpu.memory_space<vmem>>, %arg5: memref<2x36x68xbf16, #tpu.memory_space<vmem>>, %arg6: memref<2x36x36xbf16, #tpu.memory_space<vmem>>, %arg7: memref<3x128x256xbf16, #tpu.memory_space<vmem>>, %arg8: memref<1x128xf32, #tpu.memory_space<vmem>>, %arg9: memref<2x20x36xbf16, #tpu.memory_space<vmem>>, %arg10: memref<2x20x20xbf16, #tpu.memory_space<vmem>>, %arg11: memref<3x128x256xbf16, #tpu.memory_space<vmem>>, %arg12: memref<1x128xf32, #tpu.memory_space<vmem>>, %arg13: memref<2x8x20xbf16, #tpu.memory_space<vmem>>, %arg14: memref<4x128x256xbf16, #tpu.memory_space<vmem>>, %arg15: memref<4x2x8xbf16, #tpu.memory_space<vmem>>, %arg16: memref<1x256xf32, #tpu.memory_space<vmem>>, %arg17: memref<256x128xbf16, #tpu.memory_space<vmem>>, %arg18: memref<1x128xf32, #tpu.memory_space<vmem>>, %arg19: memref<128x10xbf16, #tpu.memory_space<vmem>>, %arg20: memref<1x10xf32, #tpu.memory_space<vmem>>, %arg21: memref<1x2x10xf32, #tpu.memory_space<vmem>>) attributes {dimension_semantics = [#tpu.dimension_semantics<parallel>], iteration_bounds = array<i64: 2>, scalar_prefetch = 0 : i64, scratch_operands = 0 : i64, tpu.core_type = #tpu.core_type<tc>, window_params = [{transform_indices = @transform_0, window_bounds = array<i64: 1, 68, 96>}, {pipeline_mode = #tpu.pipeline_mode<synchronous>, transform_indices = @transform_1, window_bounds = array<i64: 2, 68, 68>}, {pipeline_mode = #tpu.pipeline_mode<synchronous>, transform_indices = @transform_2, window_bounds = array<i64: 3, 96, 256>}, {pipeline_mode = #tpu.pipeline_mode<synchronous>, transform_indices = @transform_3, window_bounds = array<i64: 1, 128>}, {pipeline_mode = #tpu.pipeline_mode<synchronous>, transform_indices = @transform_4, window_bounds = array<i64: 2, 36, 68>}, {pipeline_mode = #tpu.pipeline_mode<synchronous>, transform_indices = @transform_5, window_bounds = array<i64: 2, 36, 36>}, {pipeline_mode = #tpu.pipeline_mode<synchronous>, transform_indices = @transform_6, window_bounds = array<i64: 3, 128, 256>}, {pipeline_mode = #tpu.pipeline_mode<synchronous>, transform_indices = @transform_7, window_bounds = array<i64: 1, 128>}, {pipeline_mode = #tpu.pipeline_mode<synchronous>, transform_indices = @transform_8, window_bounds = array<i64: 2, 20, 36>}, {pipeline_mode = #tpu.pipeline_mode<synchronous>, transform_indices = @transform_9, window_bounds = array<i64: 2, 20, 20>}, {pipeline_mode = #tpu.pipeline_mode<synchronous>, transform_indices = @transform_10, window_bounds = array<i64: 3, 128, 256>}, {pipeline_mode = #tpu.pipeline_mode<synchronous>, transform_indices = @transform_11, window_bounds = array<i64: 1, 128>}, {pipeline_mode = #tpu.pipeline_mode<synchronous>, transform_indices = @transform_12, window_bounds = array<i64: 2, 8, 20>}, {pipeline_mode = #tpu.pipeline_mode<synchronous>, transform_indices = @transform_13, window_bounds = array<i64: 4, 128, 256>}, {pipeline_mode = #tpu.pipeline_mode<synchronous>, transform_indices = @transform_14, window_bounds = array<i64: 4, 2, 8>}, {pipeline_mode = #tpu.pipeline_mode<synchronous>, transform_indices = @transform_15, window_bounds = array<i64: 1, 256>}, {pipeline_mode = #tpu.pipeline_mode<synchronous>, transform_indices = @transform_16, window_bounds = array<i64: 256, 128>}, {pipeline_mode = #tpu.pipeline_mode<synchronous>, transform_indices = @transform_17, window_bounds = array<i64: 1, 128>}, {pipeline_mode = #tpu.pipeline_mode<synchronous>, transform_indices = @transform_18, window_bounds = array<i64: 128, 10>}, {pipeline_mode = #tpu.pipeline_mode<synchronous>, transform_indices = @transform_19, window_bounds = array<i64: 1, 10>}, {transform_indices = @transform_20, window_bounds = array<i64: 1, 2, 10>}]} {
    %c0 = arith.constant 0 : index
    %c0_0 = arith.constant 0 : index
    %c0_1 = arith.constant 0 : index
    %0 = vector.load %arg1[%c0, %c0_0, %c0_1] : memref<1x68x96xf32, #tpu.memory_space<vmem>>, vector<1x68x96xf32>
    %1 = vector.shape_cast %0 : vector<1x68x96xf32> to vector<68x96xf32>
    %2 = arith.truncf %1 : vector<68x96xf32> to vector<68x96xbf16>
    %c0_2 = arith.constant 0 : index
    %c0_3 = arith.constant 0 : index
    %c0_4 = arith.constant 0 : index
    %3 = vector.load %arg2[%c0_2, %c0_3, %c0_4] : memref<2x68x68xbf16, #tpu.memory_space<vmem>>, vector<1x68x68xbf16>
    %4 = vector.shape_cast %3 : vector<1x68x68xbf16> to vector<68x68xbf16>
    %cst = arith.constant dense<0.000000e+00> : vector<68x96xf32>
    %5 = tpu.matmul %4, %2, %cst {dimension_numbers = #tpu.dot_dimension_numbers<[1], [0], [0], [1], [0, 0, 1, 1], [], []>} : vector<68x68xbf16>, vector<68x96xbf16>, vector<68x96xf32> -> vector<68x96xf32>
    %6 = arith.truncf %5 : vector<68x96xf32> to vector<68x96xbf16>
    %c1 = arith.constant 1 : index
    %c0_5 = arith.constant 0 : index
    %c0_6 = arith.constant 0 : index
    %7 = vector.load %arg2[%c1, %c0_5, %c0_6] : memref<2x68x68xbf16, #tpu.memory_space<vmem>>, vector<1x68x68xbf16>
    %8 = vector.shape_cast %7 : vector<1x68x68xbf16> to vector<68x68xbf16>
    %cst_7 = arith.constant dense<0.000000e+00> : vector<68x96xf32>
    %9 = tpu.matmul %8, %2, %cst_7 {dimension_numbers = #tpu.dot_dimension_numbers<[1], [0], [0], [1], [0, 0, 1, 1], [], []>} : vector<68x68xbf16>, vector<68x96xbf16>, vector<68x96xf32> -> vector<68x96xf32>
    %10 = arith.truncf %9 : vector<68x96xf32> to vector<68x96xbf16>
    %c0_8 = arith.constant 0 : index
    %c0_9 = arith.constant 0 : index
    %c0_10 = arith.constant 0 : index
    %11 = vector.load %arg3[%c0_8, %c0_9, %c0_10] : memref<3x96x256xbf16, #tpu.memory_space<vmem>>, vector<1x96x256xbf16>
    %12 = vector.shape_cast %11 : vector<1x96x256xbf16> to vector<96x256xbf16>
    %cst_11 = arith.constant dense<0.000000e+00> : vector<68x256xf32>
    %13 = tpu.matmul %2, %12, %cst_11 {dimension_numbers = #tpu.dot_dimension_numbers<[1], [0], [0], [1], [0, 0, 1, 1], [], []>} : vector<68x96xbf16>, vector<96x256xbf16>, vector<68x256xf32> -> vector<68x256xf32>
    %c1_12 = arith.constant 1 : index
    %c0_13 = arith.constant 0 : index
    %c0_14 = arith.constant 0 : index
    %14 = vector.load %arg3[%c1_12, %c0_13, %c0_14] : memref<3x96x256xbf16, #tpu.memory_space<vmem>>, vector<1x96x256xbf16>
    %15 = vector.shape_cast %14 : vector<1x96x256xbf16> to vector<96x256xbf16>
    %cst_15 = arith.constant dense<0.000000e+00> : vector<68x256xf32>
    %16 = tpu.matmul %6, %15, %cst_15 {dimension_numbers = #tpu.dot_dimension_numbers<[1], [0], [0], [1], [0, 0, 1, 1], [], []>} : vector<68x96xbf16>, vector<96x256xbf16>, vector<68x256xf32> -> vector<68x256xf32>
    %17 = arith.addf %13, %16 : vector<68x256xf32>
    %c2 = arith.constant 2 : index
    %c0_16 = arith.constant 0 : index
    %c0_17 = arith.constant 0 : index
    %18 = vector.load %arg3[%c2, %c0_16, %c0_17] : memref<3x96x256xbf16, #tpu.memory_space<vmem>>, vector<1x96x256xbf16>
    %19 = vector.shape_cast %18 : vector<1x96x256xbf16> to vector<96x256xbf16>
    %cst_18 = arith.constant dense<0.000000e+00> : vector<68x256xf32>
    %20 = tpu.matmul %10, %19, %cst_18 {dimension_numbers = #tpu.dot_dimension_numbers<[1], [0], [0], [1], [0, 0, 1, 1], [], []>} : vector<68x96xbf16>, vector<96x256xbf16>, vector<68x256xf32> -> vector<68x256xf32>
    %21 = arith.addf %17, %20 : vector<68x256xf32>
    %22 = vector.extract_strided_slice %21 {offsets = [0, 0], sizes = [68, 128], strides = [1, 1]} : vector<68x256xf32> to vector<68x128xf32>
    %23 = vector.extract_strided_slice %21 {offsets = [0, 128], sizes = [68, 128], strides = [1, 1]} : vector<68x256xf32> to vector<68x128xf32>
    %24 = arith.maximumf %22, %23 : vector<68x128xf32>
    %c0_19 = arith.constant 0 : index
    %c0_20 = arith.constant 0 : index
    %25 = vector.load %arg4[%c0_19, %c0_20] : memref<1x128xf32, #tpu.memory_space<vmem>>, vector<1x128xf32>
    %26 = vector.broadcast %25 : vector<1x128xf32> to vector<68x128xf32>
    %27 = arith.addf %24, %26 : vector<68x128xf32>
    %cst_21 = arith.constant 0.000000e+00 : f32
    %28 = vector.broadcast %cst_21 : f32 to vector<68x128xf32>
    %29 = arith.cmpf oge, %27, %28 : vector<68x128xf32>
    %cst_22 = arith.constant 0.00999999977 : f32
    %30 = vector.broadcast %cst_22 : f32 to vector<68x128xf32>
    %31 = arith.mulf %30, %27 : vector<68x128xf32>
    %32 = arith.select %29, %27, %31 : vector<68x128xi1>, vector<68x128xf32>
    %33 = arith.truncf %32 : vector<68x128xf32> to vector<68x128xbf16>
    %c0_23 = arith.constant 0 : index
    %c0_24 = arith.constant 0 : index
    %c0_25 = arith.constant 0 : index
    %34 = vector.load %arg5[%c0_23, %c0_24, %c0_25] : memref<2x36x68xbf16, #tpu.memory_space<vmem>>, vector<1x36x68xbf16>
    %35 = vector.shape_cast %34 : vector<1x36x68xbf16> to vector<36x68xbf16>
    %cst_26 = arith.constant dense<0.000000e+00> : vector<36x128xf32>
    %36 = tpu.matmul %35, %33, %cst_26 {dimension_numbers = #tpu.dot_dimension_numbers<[1], [0], [0], [1], [0, 0, 1, 1], [], []>} : vector<36x68xbf16>, vector<68x128xbf16>, vector<36x128xf32> -> vector<36x128xf32>
    %c1_27 = arith.constant 1 : index
    %c0_28 = arith.constant 0 : index
    %c0_29 = arith.constant 0 : index
    %37 = vector.load %arg5[%c1_27, %c0_28, %c0_29] : memref<2x36x68xbf16, #tpu.memory_space<vmem>>, vector<1x36x68xbf16>
    %38 = vector.shape_cast %37 : vector<1x36x68xbf16> to vector<36x68xbf16>
    %cst_30 = arith.constant dense<0.000000e+00> : vector<36x128xf32>
    %39 = tpu.matmul %38, %33, %cst_30 {dimension_numbers = #tpu.dot_dimension_numbers<[1], [0], [0], [1], [0, 0, 1, 1], [], []>} : vector<36x68xbf16>, vector<68x128xbf16>, vector<36x128xf32> -> vector<36x128xf32>
    %40 = arith.maximumf %36, %39 : vector<36x128xf32>
    %41 = arith.truncf %40 : vector<36x128xf32> to vector<36x128xbf16>
    %c0_31 = arith.constant 0 : index
    %c0_32 = arith.constant 0 : index
    %c0_33 = arith.constant 0 : index
    %42 = vector.load %arg6[%c0_31, %c0_32, %c0_33] : memref<2x36x36xbf16, #tpu.memory_space<vmem>>, vector<1x36x36xbf16>
    %43 = vector.shape_cast %42 : vector<1x36x36xbf16> to vector<36x36xbf16>
    %cst_34 = arith.constant dense<0.000000e+00> : vector<36x128xf32>
    %44 = tpu.matmul %43, %41, %cst_34 {dimension_numbers = #tpu.dot_dimension_numbers<[1], [0], [0], [1], [0, 0, 1, 1], [], []>} : vector<36x36xbf16>, vector<36x128xbf16>, vector<36x128xf32> -> vector<36x128xf32>
    %45 = arith.truncf %44 : vector<36x128xf32> to vector<36x128xbf16>
    %c1_35 = arith.constant 1 : index
    %c0_36 = arith.constant 0 : index
    %c0_37 = arith.constant 0 : index
    %46 = vector.load %arg6[%c1_35, %c0_36, %c0_37] : memref<2x36x36xbf16, #tpu.memory_space<vmem>>, vector<1x36x36xbf16>
    %47 = vector.shape_cast %46 : vector<1x36x36xbf16> to vector<36x36xbf16>
    %cst_38 = arith.constant dense<0.000000e+00> : vector<36x128xf32>
    %48 = tpu.matmul %47, %41, %cst_38 {dimension_numbers = #tpu.dot_dimension_numbers<[1], [0], [0], [1], [0, 0, 1, 1], [], []>} : vector<36x36xbf16>, vector<36x128xbf16>, vector<36x128xf32> -> vector<36x128xf32>
    %49 = arith.truncf %48 : vector<36x128xf32> to vector<36x128xbf16>
    %c0_39 = arith.constant 0 : index
    %c0_40 = arith.constant 0 : index
    %c0_41 = arith.constant 0 : index
    %50 = vector.load %arg7[%c0_39, %c0_40, %c0_41] : memref<3x128x256xbf16, #tpu.memory_space<vmem>>, vector<1x128x256xbf16>
    %51 = vector.shape_cast %50 : vector<1x128x256xbf16> to vector<128x256xbf16>
    %cst_42 = arith.constant dense<0.000000e+00> : vector<36x256xf32>
    %52 = tpu.matmul %41, %51, %cst_42 {dimension_numbers = #tpu.dot_dimension_numbers<[1], [0], [0], [1], [0, 0, 1, 1], [], []>} : vector<36x128xbf16>, vector<128x256xbf16>, vector<36x256xf32> -> vector<36x256xf32>
    %c1_43 = arith.constant 1 : index
    %c0_44 = arith.constant 0 : index
    %c0_45 = arith.constant 0 : index
    %53 = vector.load %arg7[%c1_43, %c0_44, %c0_45] : memref<3x128x256xbf16, #tpu.memory_space<vmem>>, vector<1x128x256xbf16>
    %54 = vector.shape_cast %53 : vector<1x128x256xbf16> to vector<128x256xbf16>
    %cst_46 = arith.constant dense<0.000000e+00> : vector<36x256xf32>
    %55 = tpu.matmul %45, %54, %cst_46 {dimension_numbers = #tpu.dot_dimension_numbers<[1], [0], [0], [1], [0, 0, 1, 1], [], []>} : vector<36x128xbf16>, vector<128x256xbf16>, vector<36x256xf32> -> vector<36x256xf32>
    %56 = arith.addf %52, %55 : vector<36x256xf32>
    %c2_47 = arith.constant 2 : index
    %c0_48 = arith.constant 0 : index
    %c0_49 = arith.constant 0 : index
    %57 = vector.load %arg7[%c2_47, %c0_48, %c0_49] : memref<3x128x256xbf16, #tpu.memory_space<vmem>>, vector<1x128x256xbf16>
    %58 = vector.shape_cast %57 : vector<1x128x256xbf16> to vector<128x256xbf16>
    %cst_50 = arith.constant dense<0.000000e+00> : vector<36x256xf32>
    %59 = tpu.matmul %49, %58, %cst_50 {dimension_numbers = #tpu.dot_dimension_numbers<[1], [0], [0], [1], [0, 0, 1, 1], [], []>} : vector<36x128xbf16>, vector<128x256xbf16>, vector<36x256xf32> -> vector<36x256xf32>
    %60 = arith.addf %56, %59 : vector<36x256xf32>
    %61 = vector.extract_strided_slice %60 {offsets = [0, 0], sizes = [36, 128], strides = [1, 1]} : vector<36x256xf32> to vector<36x128xf32>
    %62 = vector.extract_strided_slice %60 {offsets = [0, 128], sizes = [36, 128], strides = [1, 1]} : vector<36x256xf32> to vector<36x128xf32>
    %63 = arith.maximumf %61, %62 : vector<36x128xf32>
    %c0_51 = arith.constant 0 : index
    %c0_52 = arith.constant 0 : index
    %64 = vector.load %arg8[%c0_51, %c0_52] : memref<1x128xf32, #tpu.memory_space<vmem>>, vector<1x128xf32>
    %65 = vector.broadcast %64 : vector<1x128xf32> to vector<36x128xf32>
    %66 = arith.addf %63, %65 : vector<36x128xf32>
    %cst_53 = arith.constant 0.000000e+00 : f32
    %67 = vector.broadcast %cst_53 : f32 to vector<36x128xf32>
    %68 = arith.cmpf oge, %66, %67 : vector<36x128xf32>
    %cst_54 = arith.constant 0.00999999977 : f32
    %69 = vector.broadcast %cst_54 : f32 to vector<36x128xf32>
    %70 = arith.mulf %69, %66 : vector<36x128xf32>
    %71 = arith.select %68, %66, %70 : vector<36x128xi1>, vector<36x128xf32>
    %72 = arith.truncf %71 : vector<36x128xf32> to vector<36x128xbf16>
    %c0_55 = arith.constant 0 : index
    %c0_56 = arith.constant 0 : index
    %c0_57 = arith.constant 0 : index
    %73 = vector.load %arg9[%c0_55, %c0_56, %c0_57] : memref<2x20x36xbf16, #tpu.memory_space<vmem>>, vector<1x20x36xbf16>
    %74 = vector.shape_cast %73 : vector<1x20x36xbf16> to vector<20x36xbf16>
    %cst_58 = arith.constant dense<0.000000e+00> : vector<20x128xf32>
    %75 = tpu.matmul %74, %72, %cst_58 {dimension_numbers = #tpu.dot_dimension_numbers<[1], [0], [0], [1], [0, 0, 1, 1], [], []>} : vector<20x36xbf16>, vector<36x128xbf16>, vector<20x128xf32> -> vector<20x128xf32>
    %c1_59 = arith.constant 1 : index
    %c0_60 = arith.constant 0 : index
    %c0_61 = arith.constant 0 : index
    %76 = vector.load %arg9[%c1_59, %c0_60, %c0_61] : memref<2x20x36xbf16, #tpu.memory_space<vmem>>, vector<1x20x36xbf16>
    %77 = vector.shape_cast %76 : vector<1x20x36xbf16> to vector<20x36xbf16>
    %cst_62 = arith.constant dense<0.000000e+00> : vector<20x128xf32>
    %78 = tpu.matmul %77, %72, %cst_62 {dimension_numbers = #tpu.dot_dimension_numbers<[1], [0], [0], [1], [0, 0, 1, 1], [], []>} : vector<20x36xbf16>, vector<36x128xbf16>, vector<20x128xf32> -> vector<20x128xf32>
    %79 = arith.maximumf %75, %78 : vector<20x128xf32>
    %80 = arith.truncf %79 : vector<20x128xf32> to vector<20x128xbf16>
    %c0_63 = arith.constant 0 : index
    %c0_64 = arith.constant 0 : index
    %c0_65 = arith.constant 0 : index
    %81 = vector.load %arg10[%c0_63, %c0_64, %c0_65] : memref<2x20x20xbf16, #tpu.memory_space<vmem>>, vector<1x20x20xbf16>
    %82 = vector.shape_cast %81 : vector<1x20x20xbf16> to vector<20x20xbf16>
    %cst_66 = arith.constant dense<0.000000e+00> : vector<20x128xf32>
    %83 = tpu.matmul %82, %80, %cst_66 {dimension_numbers = #tpu.dot_dimension_numbers<[1], [0], [0], [1], [0, 0, 1, 1], [], []>} : vector<20x20xbf16>, vector<20x128xbf16>, vector<20x128xf32> -> vector<20x128xf32>
    %84 = arith.truncf %83 : vector<20x128xf32> to vector<20x128xbf16>
    %c1_67 = arith.constant 1 : index
    %c0_68 = arith.constant 0 : index
    %c0_69 = arith.constant 0 : index
    %85 = vector.load %arg10[%c1_67, %c0_68, %c0_69] : memref<2x20x20xbf16, #tpu.memory_space<vmem>>, vector<1x20x20xbf16>
    %86 = vector.shape_cast %85 : vector<1x20x20xbf16> to vector<20x20xbf16>
    %cst_70 = arith.constant dense<0.000000e+00> : vector<20x128xf32>
    %87 = tpu.matmul %86, %80, %cst_70 {dimension_numbers = #tpu.dot_dimension_numbers<[1], [0], [0], [1], [0, 0, 1, 1], [], []>} : vector<20x20xbf16>, vector<20x128xbf16>, vector<20x128xf32> -> vector<20x128xf32>
    %88 = arith.truncf %87 : vector<20x128xf32> to vector<20x128xbf16>
    %c0_71 = arith.constant 0 : index
    %c0_72 = arith.constant 0 : index
    %c0_73 = arith.constant 0 : index
    %89 = vector.load %arg11[%c0_71, %c0_72, %c0_73] : memref<3x128x256xbf16, #tpu.memory_space<vmem>>, vector<1x128x256xbf16>
    %90 = vector.shape_cast %89 : vector<1x128x256xbf16> to vector<128x256xbf16>
    %cst_74 = arith.constant dense<0.000000e+00> : vector<20x256xf32>
    %91 = tpu.matmul %80, %90, %cst_74 {dimension_numbers = #tpu.dot_dimension_numbers<[1], [0], [0], [1], [0, 0, 1, 1], [], []>} : vector<20x128xbf16>, vector<128x256xbf16>, vector<20x256xf32> -> vector<20x256xf32>
    %c1_75 = arith.constant 1 : index
    %c0_76 = arith.constant 0 : index
    %c0_77 = arith.constant 0 : index
    %92 = vector.load %arg11[%c1_75, %c0_76, %c0_77] : memref<3x128x256xbf16, #tpu.memory_space<vmem>>, vector<1x128x256xbf16>
    %93 = vector.shape_cast %92 : vector<1x128x256xbf16> to vector<128x256xbf16>
    %cst_78 = arith.constant dense<0.000000e+00> : vector<20x256xf32>
    %94 = tpu.matmul %84, %93, %cst_78 {dimension_numbers = #tpu.dot_dimension_numbers<[1], [0], [0], [1], [0, 0, 1, 1], [], []>} : vector<20x128xbf16>, vector<128x256xbf16>, vector<20x256xf32> -> vector<20x256xf32>
    %95 = arith.addf %91, %94 : vector<20x256xf32>
    %c2_79 = arith.constant 2 : index
    %c0_80 = arith.constant 0 : index
    %c0_81 = arith.constant 0 : index
    %96 = vector.load %arg11[%c2_79, %c0_80, %c0_81] : memref<3x128x256xbf16, #tpu.memory_space<vmem>>, vector<1x128x256xbf16>
    %97 = vector.shape_cast %96 : vector<1x128x256xbf16> to vector<128x256xbf16>
    %cst_82 = arith.constant dense<0.000000e+00> : vector<20x256xf32>
    %98 = tpu.matmul %88, %97, %cst_82 {dimension_numbers = #tpu.dot_dimension_numbers<[1], [0], [0], [1], [0, 0, 1, 1], [], []>} : vector<20x128xbf16>, vector<128x256xbf16>, vector<20x256xf32> -> vector<20x256xf32>
    %99 = arith.addf %95, %98 : vector<20x256xf32>
    %100 = vector.extract_strided_slice %99 {offsets = [0, 0], sizes = [20, 128], strides = [1, 1]} : vector<20x256xf32> to vector<20x128xf32>
    %101 = vector.extract_strided_slice %99 {offsets = [0, 128], sizes = [20, 128], strides = [1, 1]} : vector<20x256xf32> to vector<20x128xf32>
    %102 = arith.maximumf %100, %101 : vector<20x128xf32>
    %c0_83 = arith.constant 0 : index
    %c0_84 = arith.constant 0 : index
    %103 = vector.load %arg12[%c0_83, %c0_84] : memref<1x128xf32, #tpu.memory_space<vmem>>, vector<1x128xf32>
    %104 = vector.broadcast %103 : vector<1x128xf32> to vector<20x128xf32>
    %105 = arith.addf %102, %104 : vector<20x128xf32>
    %cst_85 = arith.constant 0.000000e+00 : f32
    %106 = vector.broadcast %cst_85 : f32 to vector<20x128xf32>
    %107 = arith.cmpf oge, %105, %106 : vector<20x128xf32>
    %cst_86 = arith.constant 0.00999999977 : f32
    %108 = vector.broadcast %cst_86 : f32 to vector<20x128xf32>
    %109 = arith.mulf %108, %105 : vector<20x128xf32>
    %110 = arith.select %107, %105, %109 : vector<20x128xi1>, vector<20x128xf32>
    %111 = arith.truncf %110 : vector<20x128xf32> to vector<20x128xbf16>
    %c0_87 = arith.constant 0 : index
    %c0_88 = arith.constant 0 : index
    %c0_89 = arith.constant 0 : index
    %112 = vector.load %arg13[%c0_87, %c0_88, %c0_89] : memref<2x8x20xbf16, #tpu.memory_space<vmem>>, vector<1x8x20xbf16>
    %113 = vector.shape_cast %112 : vector<1x8x20xbf16> to vector<8x20xbf16>
    %cst_90 = arith.constant dense<0.000000e+00> : vector<8x128xf32>
    %114 = tpu.matmul %113, %111, %cst_90 {dimension_numbers = #tpu.dot_dimension_numbers<[1], [0], [0], [1], [0, 0, 1, 1], [], []>} : vector<8x20xbf16>, vector<20x128xbf16>, vector<8x128xf32> -> vector<8x128xf32>
    %c1_91 = arith.constant 1 : index
    %c0_92 = arith.constant 0 : index
    %c0_93 = arith.constant 0 : index
    %115 = vector.load %arg13[%c1_91, %c0_92, %c0_93] : memref<2x8x20xbf16, #tpu.memory_space<vmem>>, vector<1x8x20xbf16>
    %116 = vector.shape_cast %115 : vector<1x8x20xbf16> to vector<8x20xbf16>
    %cst_94 = arith.constant dense<0.000000e+00> : vector<8x128xf32>
    %117 = tpu.matmul %116, %111, %cst_94 {dimension_numbers = #tpu.dot_dimension_numbers<[1], [0], [0], [1], [0, 0, 1, 1], [], []>} : vector<8x20xbf16>, vector<20x128xbf16>, vector<8x128xf32> -> vector<8x128xf32>
    %118 = arith.maximumf %114, %117 : vector<8x128xf32>
    %119 = arith.truncf %118 : vector<8x128xf32> to vector<8x128xbf16>
    %c0_95 = arith.constant 0 : index
    %c0_96 = arith.constant 0 : index
    %c0_97 = arith.constant 0 : index
    %120 = vector.load %arg15[%c0_95, %c0_96, %c0_97] : memref<4x2x8xbf16, #tpu.memory_space<vmem>>, vector<1x2x8xbf16>
    %121 = vector.shape_cast %120 : vector<1x2x8xbf16> to vector<2x8xbf16>
    %cst_98 = arith.constant dense<0.000000e+00> : vector<2x128xf32>
    %122 = tpu.matmul %121, %119, %cst_98 {dimension_numbers = #tpu.dot_dimension_numbers<[1], [0], [0], [1], [0, 0, 1, 1], [], []>} : vector<2x8xbf16>, vector<8x128xbf16>, vector<2x128xf32> -> vector<2x128xf32>
    %123 = arith.truncf %122 : vector<2x128xf32> to vector<2x128xbf16>
    %c0_99 = arith.constant 0 : index
    %c0_100 = arith.constant 0 : index
    %c0_101 = arith.constant 0 : index
    %124 = vector.load %arg14[%c0_99, %c0_100, %c0_101] : memref<4x128x256xbf16, #tpu.memory_space<vmem>>, vector<1x128x256xbf16>
    %125 = vector.shape_cast %124 : vector<1x128x256xbf16> to vector<128x256xbf16>
    %cst_102 = arith.constant dense<0.000000e+00> : vector<2x256xf32>
    %126 = tpu.matmul %123, %125, %cst_102 {dimension_numbers = #tpu.dot_dimension_numbers<[1], [0], [0], [1], [0, 0, 1, 1], [], []>} : vector<2x128xbf16>, vector<128x256xbf16>, vector<2x256xf32> -> vector<2x256xf32>
    %c1_103 = arith.constant 1 : index
    %c0_104 = arith.constant 0 : index
    %c0_105 = arith.constant 0 : index
    %127 = vector.load %arg15[%c1_103, %c0_104, %c0_105] : memref<4x2x8xbf16, #tpu.memory_space<vmem>>, vector<1x2x8xbf16>
    %128 = vector.shape_cast %127 : vector<1x2x8xbf16> to vector<2x8xbf16>
    %cst_106 = arith.constant dense<0.000000e+00> : vector<2x128xf32>
    %129 = tpu.matmul %128, %119, %cst_106 {dimension_numbers = #tpu.dot_dimension_numbers<[1], [0], [0], [1], [0, 0, 1, 1], [], []>} : vector<2x8xbf16>, vector<8x128xbf16>, vector<2x128xf32> -> vector<2x128xf32>
    %130 = arith.truncf %129 : vector<2x128xf32> to vector<2x128xbf16>
    %c1_107 = arith.constant 1 : index
    %c0_108 = arith.constant 0 : index
    %c0_109 = arith.constant 0 : index
    %131 = vector.load %arg14[%c1_107, %c0_108, %c0_109] : memref<4x128x256xbf16, #tpu.memory_space<vmem>>, vector<1x128x256xbf16>
    %132 = vector.shape_cast %131 : vector<1x128x256xbf16> to vector<128x256xbf16>
    %cst_110 = arith.constant dense<0.000000e+00> : vector<2x256xf32>
    %133 = tpu.matmul %130, %132, %cst_110 {dimension_numbers = #tpu.dot_dimension_numbers<[1], [0], [0], [1], [0, 0, 1, 1], [], []>} : vector<2x128xbf16>, vector<128x256xbf16>, vector<2x256xf32> -> vector<2x256xf32>
    %134 = arith.addf %126, %133 : vector<2x256xf32>
    %c2_111 = arith.constant 2 : index
    %c0_112 = arith.constant 0 : index
    %c0_113 = arith.constant 0 : index
    %135 = vector.load %arg15[%c2_111, %c0_112, %c0_113] : memref<4x2x8xbf16, #tpu.memory_space<vmem>>, vector<1x2x8xbf16>
    %136 = vector.shape_cast %135 : vector<1x2x8xbf16> to vector<2x8xbf16>
    %cst_114 = arith.constant dense<0.000000e+00> : vector<2x128xf32>
    %137 = tpu.matmul %136, %119, %cst_114 {dimension_numbers = #tpu.dot_dimension_numbers<[1], [0], [0], [1], [0, 0, 1, 1], [], []>} : vector<2x8xbf16>, vector<8x128xbf16>, vector<2x128xf32> -> vector<2x128xf32>
    %138 = arith.truncf %137 : vector<2x128xf32> to vector<2x128xbf16>
    %c2_115 = arith.constant 2 : index
    %c0_116 = arith.constant 0 : index
    %c0_117 = arith.constant 0 : index
    %139 = vector.load %arg14[%c2_115, %c0_116, %c0_117] : memref<4x128x256xbf16, #tpu.memory_space<vmem>>, vector<1x128x256xbf16>
    %140 = vector.shape_cast %139 : vector<1x128x256xbf16> to vector<128x256xbf16>
    %cst_118 = arith.constant dense<0.000000e+00> : vector<2x256xf32>
    %141 = tpu.matmul %138, %140, %cst_118 {dimension_numbers = #tpu.dot_dimension_numbers<[1], [0], [0], [1], [0, 0, 1, 1], [], []>} : vector<2x128xbf16>, vector<128x256xbf16>, vector<2x256xf32> -> vector<2x256xf32>
    %142 = arith.addf %134, %141 : vector<2x256xf32>
    %c3 = arith.constant 3 : index
    %c0_119 = arith.constant 0 : index
    %c0_120 = arith.constant 0 : index
    %143 = vector.load %arg15[%c3, %c0_119, %c0_120] : memref<4x2x8xbf16, #tpu.memory_space<vmem>>, vector<1x2x8xbf16>
    %144 = vector.shape_cast %143 : vector<1x2x8xbf16> to vector<2x8xbf16>
    %cst_121 = arith.constant dense<0.000000e+00> : vector<2x128xf32>
    %145 = tpu.matmul %144, %119, %cst_121 {dimension_numbers = #tpu.dot_dimension_numbers<[1], [0], [0], [1], [0, 0, 1, 1], [], []>} : vector<2x8xbf16>, vector<8x128xbf16>, vector<2x128xf32> -> vector<2x128xf32>
    %146 = arith.truncf %145 : vector<2x128xf32> to vector<2x128xbf16>
    %c3_122 = arith.constant 3 : index
    %c0_123 = arith.constant 0 : index
    %c0_124 = arith.constant 0 : index
    %147 = vector.load %arg14[%c3_122, %c0_123, %c0_124] : memref<4x128x256xbf16, #tpu.memory_space<vmem>>, vector<1x128x256xbf16>
    %148 = vector.shape_cast %147 : vector<1x128x256xbf16> to vector<128x256xbf16>
    %cst_125 = arith.constant dense<0.000000e+00> : vector<2x256xf32>
    %149 = tpu.matmul %146, %148, %cst_125 {dimension_numbers = #tpu.dot_dimension_numbers<[1], [0], [0], [1], [0, 0, 1, 1], [], []>} : vector<2x128xbf16>, vector<128x256xbf16>, vector<2x256xf32> -> vector<2x256xf32>
    %150 = arith.addf %142, %149 : vector<2x256xf32>
    %c0_126 = arith.constant 0 : index
    %c0_127 = arith.constant 0 : index
    %151 = vector.load %arg16[%c0_126, %c0_127] : memref<1x256xf32, #tpu.memory_space<vmem>>, vector<1x256xf32>
    %152 = vector.broadcast %151 : vector<1x256xf32> to vector<2x256xf32>
    %153 = arith.addf %150, %152 : vector<2x256xf32>
    %cst_128 = arith.constant 0.000000e+00 : f32
    %154 = vector.broadcast %cst_128 : f32 to vector<2x256xf32>
    %155 = arith.cmpf oge, %153, %154 : vector<2x256xf32>
    %cst_129 = arith.constant 0.00999999977 : f32
    %156 = vector.broadcast %cst_129 : f32 to vector<2x256xf32>
    %157 = arith.mulf %156, %153 : vector<2x256xf32>
    %158 = arith.select %155, %153, %157 : vector<2x256xi1>, vector<2x256xf32>
    %159 = arith.truncf %158 : vector<2x256xf32> to vector<2x256xbf16>
    %c0_130 = arith.constant 0 : index
    %c0_131 = arith.constant 0 : index
    %160 = vector.load %arg17[%c0_130, %c0_131] : memref<256x128xbf16, #tpu.memory_space<vmem>>, vector<256x128xbf16>
    %cst_132 = arith.constant dense<0.000000e+00> : vector<2x128xf32>
    %161 = tpu.matmul %159, %160, %cst_132 {dimension_numbers = #tpu.dot_dimension_numbers<[1], [0], [0], [1], [0, 0, 1, 1], [], []>} : vector<2x256xbf16>, vector<256x128xbf16>, vector<2x128xf32> -> vector<2x128xf32>
    %c0_133 = arith.constant 0 : index
    %c0_134 = arith.constant 0 : index
    %162 = vector.load %arg18[%c0_133, %c0_134] : memref<1x128xf32, #tpu.memory_space<vmem>>, vector<1x128xf32>
    %163 = vector.broadcast %162 : vector<1x128xf32> to vector<2x128xf32>
    %164 = arith.addf %161, %163 : vector<2x128xf32>
    %cst_135 = arith.constant 0.000000e+00 : f32
    %165 = vector.broadcast %cst_135 : f32 to vector<2x128xf32>
    %166 = arith.cmpf oge, %164, %165 : vector<2x128xf32>
    %cst_136 = arith.constant 0.00999999977 : f32
    %167 = vector.broadcast %cst_136 : f32 to vector<2x128xf32>
    %168 = arith.mulf %167, %164 : vector<2x128xf32>
    %169 = arith.select %166, %164, %168 : vector<2x128xi1>, vector<2x128xf32>
    %170 = arith.truncf %169 : vector<2x128xf32> to vector<2x128xbf16>
    %c0_137 = arith.constant 0 : index
    %c0_138 = arith.constant 0 : index
    %171 = vector.load %arg19[%c0_137, %c0_138] : memref<128x10xbf16, #tpu.memory_space<vmem>>, vector<128x10xbf16>
    %cst_139 = arith.constant dense<0.000000e+00> : vector<2x10xf32>
    %172 = tpu.matmul %170, %171, %cst_139 {dimension_numbers = #tpu.dot_dimension_numbers<[1], [0], [0], [1], [0, 0, 1, 1], [], []>} : vector<2x128xbf16>, vector<128x10xbf16>, vector<2x10xf32> -> vector<2x10xf32>
    %c0_140 = arith.constant 0 : index
    %c0_141 = arith.constant 0 : index
    %173 = vector.load %arg20[%c0_140, %c0_141] : memref<1x10xf32, #tpu.memory_space<vmem>>, vector<1x10xf32>
    %174 = vector.broadcast %173 : vector<1x10xf32> to vector<2x10xf32>
    %175 = arith.addf %172, %174 : vector<2x10xf32>
    %cst_142 = arith.constant dense<0xFF800000> : vector<2xf32>
    %176 = vector.multi_reduction <maximumf>, %175, %cst_142 [1] : vector<2x10xf32> to vector<2xf32>
    %177 = vector.shape_cast %176 : vector<2xf32> to vector<2x1xf32>
    %178 = vector.broadcast %177 : vector<2x1xf32> to vector<2x10xf32>
    %179 = arith.subf %175, %178 : vector<2x10xf32>
    %180 = math.exp %179 : vector<2x10xf32>
    %cst_143 = arith.constant dense<0.000000e+00> : vector<2xf32>
    %181 = vector.multi_reduction <add>, %180, %cst_143 [1] : vector<2x10xf32> to vector<2xf32>
    %182 = vector.shape_cast %181 : vector<2xf32> to vector<2x1xf32>
    %183 = tpu.reciprocal %182 {approx = true} : vector<2x1xf32> -> vector<2x1xf32>
    %184 = arith.mulf %182, %183 : vector<2x1xf32>
    %cst_144 = arith.constant 2.000000e+00 : f32
    %185 = vector.broadcast %cst_144 : f32 to vector<2x1xf32>
    %186 = arith.subf %185, %184 : vector<2x1xf32>
    %187 = arith.mulf %183, %186 : vector<2x1xf32>
    %188 = vector.broadcast %187 : vector<2x1xf32> to vector<2x10xf32>
    %189 = arith.mulf %180, %188 : vector<2x10xf32>
    %c0_145 = arith.constant 0 : index
    %c0_146 = arith.constant 0 : index
    %c0_147 = arith.constant 0 : index
    %190 = vector.load %arg21[%c0_145, %c0_146, %c0_147] : memref<1x2x10xf32, #tpu.memory_space<vmem>>, vector<1x2x10xf32>
    %191 = vector.shape_cast %190 : vector<1x2x10xf32> to vector<2x10xf32>
    %192 = vector.shape_cast %189 : vector<2x10xf32> to vector<1x2x10xf32>
    tpu.vector_store %arg21[%c0_145, %c0_146, %c0_147], %192 {strides = array<i32>} : memref<1x2x10xf32, #tpu.memory_space<vmem>>, vector<1x2x10xf32>,
    return
  }
  func.func @transform_0(%arg0: i32) -> (i32, i32, i32) {
    %c0_i32 = arith.constant 0 : i32
    %c0_i32_0 = arith.constant 0 : i32
    %c0_i32_1 = arith.constant 0 : i32
    return %arg0, %c0_i32, %c0_i32_0 : i32, i32, i32
  }
  func.func @transform_1(%arg0: i32) -> (i32, i32, i32) {
    %c0_i32 = arith.constant 0 : i32
    %c0_i32_0 = arith.constant 0 : i32
    %c0_i32_1 = arith.constant 0 : i32
    %c0_i32_2 = arith.constant 0 : i32
    return %c0_i32, %c0_i32_0, %c0_i32_1 : i32, i32, i32
  }
  func.func @transform_2(%arg0: i32) -> (i32, i32, i32) {
    %c0_i32 = arith.constant 0 : i32
    %c0_i32_0 = arith.constant 0 : i32
    %c0_i32_1 = arith.constant 0 : i32
    %c0_i32_2 = arith.constant 0 : i32
    return %c0_i32, %c0_i32_0, %c0_i32_1 : i32, i32, i32
  }
  func.func @transform_3(%arg0: i32) -> (i32, i32) {
    %c0_i32 = arith.constant 0 : i32
    %c0_i32_0 = arith.constant 0 : i32
    %c0_i32_1 = arith.constant 0 : i32
    return %c0_i32, %c0_i32_0 : i32, i32
  }
  func.func @transform_4(%arg0: i32) -> (i32, i32, i32) {
    %c0_i32 = arith.constant 0 : i32
    %c0_i32_0 = arith.constant 0 : i32
    %c0_i32_1 = arith.constant 0 : i32
    %c0_i32_2 = arith.constant 0 : i32
    return %c0_i32, %c0_i32_0, %c0_i32_1 : i32, i32, i32
  }
  func.func @transform_5(%arg0: i32) -> (i32, i32, i32) {
    %c0_i32 = arith.constant 0 : i32
    %c0_i32_0 = arith.constant 0 : i32
    %c0_i32_1 = arith.constant 0 : i32
    %c0_i32_2 = arith.constant 0 : i32
    return %c0_i32, %c0_i32_0, %c0_i32_1 : i32, i32, i32
  }
  func.func @transform_6(%arg0: i32) -> (i32, i32, i32) {
    %c0_i32 = arith.constant 0 : i32
    %c0_i32_0 = arith.constant 0 : i32
    %c0_i32_1 = arith.constant 0 : i32
    %c0_i32_2 = arith.constant 0 : i32
    return %c0_i32, %c0_i32_0, %c0_i32_1 : i32, i32, i32
  }
  func.func @transform_7(%arg0: i32) -> (i32, i32) {
    %c0_i32 = arith.constant 0 : i32
    %c0_i32_0 = arith.constant 0 : i32
    %c0_i32_1 = arith.constant 0 : i32
    return %c0_i32, %c0_i32_0 : i32, i32
  }
  func.func @transform_8(%arg0: i32) -> (i32, i32, i32) {
    %c0_i32 = arith.constant 0 : i32
    %c0_i32_0 = arith.constant 0 : i32
    %c0_i32_1 = arith.constant 0 : i32
    %c0_i32_2 = arith.constant 0 : i32
    return %c0_i32, %c0_i32_0, %c0_i32_1 : i32, i32, i32
  }
  func.func @transform_9(%arg0: i32) -> (i32, i32, i32) {
    %c0_i32 = arith.constant 0 : i32
    %c0_i32_0 = arith.constant 0 : i32
    %c0_i32_1 = arith.constant 0 : i32
    %c0_i32_2 = arith.constant 0 : i32
    return %c0_i32, %c0_i32_0, %c0_i32_1 : i32, i32, i32
  }
  func.func @transform_10(%arg0: i32) -> (i32, i32, i32) {
    %c0_i32 = arith.constant 0 : i32
    %c0_i32_0 = arith.constant 0 : i32
    %c0_i32_1 = arith.constant 0 : i32
    %c0_i32_2 = arith.constant 0 : i32
    return %c0_i32, %c0_i32_0, %c0_i32_1 : i32, i32, i32
  }
  func.func @transform_11(%arg0: i32) -> (i32, i32) {
    %c0_i32 = arith.constant 0 : i32
    %c0_i32_0 = arith.constant 0 : i32
    %c0_i32_1 = arith.constant 0 : i32
    return %c0_i32, %c0_i32_0 : i32, i32
  }
  func.func @transform_12(%arg0: i32) -> (i32, i32, i32) {
    %c0_i32 = arith.constant 0 : i32
    %c0_i32_0 = arith.constant 0 : i32
    %c0_i32_1 = arith.constant 0 : i32
    %c0_i32_2 = arith.constant 0 : i32
    return %c0_i32, %c0_i32_0, %c0_i32_1 : i32, i32, i32
  }
  func.func @transform_13(%arg0: i32) -> (i32, i32, i32) {
    %c0_i32 = arith.constant 0 : i32
    %c0_i32_0 = arith.constant 0 : i32
    %c0_i32_1 = arith.constant 0 : i32
    %c0_i32_2 = arith.constant 0 : i32
    return %c0_i32, %c0_i32_0, %c0_i32_1 : i32, i32, i32
  }
  func.func @transform_14(%arg0: i32) -> (i32, i32, i32) {
    %c0_i32 = arith.constant 0 : i32
    %c0_i32_0 = arith.constant 0 : i32
    %c0_i32_1 = arith.constant 0 : i32
    %c0_i32_2 = arith.constant 0 : i32
    return %c0_i32, %c0_i32_0, %c0_i32_1 : i32, i32, i32
  }
  func.func @transform_15(%arg0: i32) -> (i32, i32) {
    %c0_i32 = arith.constant 0 : i32
    %c0_i32_0 = arith.constant 0 : i32
    %c0_i32_1 = arith.constant 0 : i32
    return %c0_i32, %c0_i32_0 : i32, i32
  }
  func.func @transform_16(%arg0: i32) -> (i32, i32) {
    %c0_i32 = arith.constant 0 : i32
    %c0_i32_0 = arith.constant 0 : i32
    %c0_i32_1 = arith.constant 0 : i32
    return %c0_i32, %c0_i32_0 : i32, i32
  }
  func.func @transform_17(%arg0: i32) -> (i32, i32) {
    %c0_i32 = arith.constant 0 : i32
    %c0_i32_0 = arith.constant 0 : i32
    %c0_i32_1 = arith.constant 0 : i32
    return %c0_i32, %c0_i32_0 : i32, i32
  }
  func.func @transform_18(%arg0: i32) -> (i32, i32) {
    %c0_i32 = arith.constant 0 : i32
    %c0_i32_0 = arith.constant 0 : i32
    %c0_i32_1 = arith.constant 0 : i32
    return %c0_i32, %c0_i32_0 : i32, i32
  }
  func.func @transform_19(%arg0: i32) -> (i32, i32) {
    %c0_i32 = arith.constant 0 : i32
    %c0_i32_0 = arith.constant 0 : i32
    %c0_i32_1 = arith.constant 0 : i32
    return %c0_i32, %c0_i32_0 : i32, i32
  }
  func.func @transform_20(%arg0: i32) -> (i32, i32, i32) {
    %c0_i32 = arith.constant 0 : i32
    %c0_i32_0 = arith.constant 0 : i32
    %c0_i32_1 = arith.constant 0 : i32
    return %arg0, %c0_i32, %c0_i32_0 : i32, i32, i32
  }
}

</mosaic_0001>

<bundles_post_ra>
// kernel: your_cnn_forward.1
= control target key start
LH: loop header
LB: loop body
LE: loop exit
PB: predicated region body
PF: predicated region fallthrough
CT: control target
= control target key end

     0   :  { %s7022_s0 = inlined_call_operand.vmem [shape: f32[2,68,96], index: 0, kind: input, shape index: {}]   ;;  %s7023_s1 = inlined_call_operand.vmem [shape: bf16[2,68,68], index: 1, kind: input, shape index: {}]   ;;  %s7024_s2 = inlined_call_operand.vmem [shape: bf16[3,96,256], index: 2, kind: input, shape index: {}]   ;;  %s7025_s3 = inlined_call_operand.vmem [shape: f32[1,128], index: 3, kind: input, shape index: {}]   ;;  %s7026_s4 = inlined_call_operand.vmem [shape: bf16[2,36,68], index: 4, kind: input, shape index: {}]   ;;  %s7027_s5 = inlined_call_operand.vmem [shape: bf16[2,36,36], index: 5, kind: input, shape index: {}]   ;;  %s7028_s6 = inlined_call_operand.vmem [shape: bf16[3,128,256], index: 6, kind: input, shape index: {}]   ;;  %s7029_s7 = inlined_call_operand.vmem [shape: f32[1,128], index: 7, kind: input, shape index: {}]   ;;  %s7030_s8 = inlined_call_operand.vmem [shape: bf16[2,20,36], index: 8, kind: input, shape index: {}]   ;;  %s7031_s9 = inlined_call_operand.vmem [shape: bf16[2,20,20], index: 9, kind: input, shape index: {}]   ;;  %s7032_s10 = inlined_call_operand.vmem [shape: bf16[3,128,256], index: 10, kind: input, shape index: {}]   ;;  %s7033_s11 = inlined_call_operand.vmem [shape: f32[1,128], index: 11, kind: input, shape index: {}]   ;;  %s7034_s12 = inlined_call_operand.vmem [shape: bf16[2,8,20], index: 12, kind: input, shape index: {}]   ;;  %s7035_s13 = inlined_call_operand.vmem [shape: bf16[4,128,256], index: 13, kind: input, shape index: {}]   ;;  %s7036_s14 = inlined_call_operand.vmem [shape: bf16[4,2,8], index: 14, kind: input, shape index: {}]   ;;  %s7037_s15 = inlined_call_operand.vmem [shape: f32[1,256], index: 15, kind: input, shape index: {}]   ;;  %s7038_s16 = inlined_call_operand.vmem [shape: bf16[256,128], index: 16, kind: input, shape index: {}]   ;;  %s7039_s17 = inlined_call_operand.vmem [shape: f32[1,128], index: 17, kind: input, shape index: {}]   ;;  %s7040_s18 = inlined_call_operand.vmem [shape: bf16[128,10], index: 18, kind: input, shape index: {}]   ;;  %s7041_s19 = inlined_call_operand.vmem [shape: f32[1,10], index: 19, kind: input, shape index: {}]   ;;  %s7042_s20 = inlined_call_operand.hbm [shape: f32[2,2,10], index: 20, kind: output, shape index: {}]  }
   0x1   :  { %7053 = sst [smem:[#allocation11_spill]] %s7022_s0 }
   0x2   :  { %7054 = sst [smem:[#allocation12_spill]] %s7023_s1 }
   0x3   :  { %7055 = sst [smem:[#allocation13_spill]] %s7024_s2 }
   0x4   :  { %7056 = sst [smem:[#allocation14_spill]] %s7025_s3 }
   0x5   :  { %7057 = sst [smem:[#allocation15_spill]] %s7026_s4 }
   0x6   :  { %7058 = sst [smem:[#allocation16_spill]] %s7027_s5 }
   0x7   :  { %25 = vsyncpa [#allocation3], 0 }
   0x8   :  { %27 = vsyncpa [#allocation3 + $0x1], 0  ;;  %s5820_s1 = smov 0   ;;  %s5822_s22 = smov 0  }
   0x9   :  { %s5824_s23 = smov 0   ;;  %s5826_s24 = smov 0  }
   0xa LB: > { %7059 = sst [smem:[#allocation5_spill]] %s5697_s1  ;;  %s5841_s2 = sadd.s32 4294967295, %s5709_s24   ;;  %s5709_s24 = sphi %s5826_s24, %s7077_s24   ;;  %s5705_s23 = sphi %s5824_s23, %s7082_s23   ;;  %s5701_s22 = sphi %s5822_s22, %s7081_s22   ;;  %s5697_s1 = sphi %s5820_s1, %s7080_s1  }
   0xb   : > { %7060 = sst [smem:[#allocation6_spill]] %s5705_s23  ;;  %s4340_s25 = sadd.s32 4294967294, %s5709_s24  }
   0xc   : > { %7061 = sst [smem:[#allocation7_spill]] %s5709_s24  ;;  %s5845_s3 = sadd.s32 1, %s5709_s24  }
   0xd   : > { %7062 = sst [smem:[#allocation8_spill]] %s5845_s3  ;;  %s465_s26 = sadd.s32 1, %s5705_s23 }
   0xe   : > { %s462_s27 = ssub.s32 %s5709_s24, %s5845_s3  ;;  %p475_p0 = scmp.ne.s32.totalorder %s5705_s23, %s5701_s22 }
   0xf   : > { %p463_p1 = scmp.eq.s32.totalorder %s462_s27, 0  ;;  %p476_p2 = scmp.eq.s32.totalorder %s5841_s2, 1 }
  0x10   : > { %p481_p3 = scmp.ne.s32.totalorder %s5701_s22, %s5697_s1  ;;  %p482_p4 = scmp.eq.s32.totalorder %s4340_s25, 1 }
  0x11   : > { %s5856_s28 = scalar_select %p463_p1, %s5705_s23, %s465_s26  }
  0x12   : > { %p5858_p5 = por %p476_p2, %p475_p0  ;;  %p5862_p6 = por %p482_p4, %p481_p3 }
  0x13   : > { %7063 = sst [smem:[#allocation9_spill]] %s5856_s28  ;;  %p4343_p7 = scmp.ge.s32.totalorder %s5709_s24, 1 }
  0x14   : > { %s7065_s29 = scalar_select %p5862_p6, 1, 0 }
  0x15   : > { %p565_p8 = scmp.lt.s32.totalorder %s5709_s24, 3 }
  0x16   : > { %7066 = sst [smem:[#allocation10_spill]] %s7065_s29 }
  0x17   : > { %p566_p9 = pnand %p4343_p7, %p565_p8 }
  0x18   : > { %p623_p10 = scmp.lt.s32.totalorder (!%p566_p9), %s5841_s2, 1  ;;  %v5711_v0 = vmov (!%p566_p9), 0.0   ;;  %vm5712_vm0 = vmmov (!%p566_p9), 0   ;;  %s7067_s26 = sld [smem:[#allocation11_spill]] (!%p566_p9)  ;;  %vm691_vm1 = vcmask (!%p566_p9), 1041408   ;;  %vm675_vm2 = vcmask (!%p566_p9), 556032  }
  0x19   : > { %569 = sbr.rel (%p566_p9) target bundleno = 3804 (0xedc), region = 100  ;;  %4932 = vmatprep.subr.bf16.mxu0 (!%p566_p9), %v5711_v0  ;;  %4942 = vmatprep.mubr.msk.bf16.mxu0 (!%p566_p9), %vm5712_vm0, %v5711_v0  ;;  %s7068_s21 = sld [smem:[#allocation13_spill]] (!%p566_p9)  ;;  %v5713_v38 = vmov (!%p566_p9), 0   ;;  %vm982_vm3 = vcmask (!%p566_p9), 785408   ;;  %vm1674_vm13 = vcmask (!%p566_p9), 293888  }
  0x1a   : > { %4962 = vmatprep.subr.bf16.mxu1 (!%p566_p9), %v5711_v0  ;;  %4972 = vmatprep.mubr.msk.bf16.mxu1 (!%p566_p9), %vm5712_vm0, %v5711_v0  ;;  %s7070_s29 = sld [smem:[#allocation14_spill]] (!%p566_p9)  ;;  %s7071_s24 = sld [smem:[#allocation15_spill]] (!%p566_p9) }
  0x1b   : > { %s7073_s5 = sld [smem:[#allocation16_spill]] (!%p566_p9)  ;;  %s620_s23 = sand.u32 (!%p566_p9), 1, %s5701_s22  }
  0x1c   : > { %s4344_s28 = sshll.u32 (!%p566_p9), %s620_s23, 1 }
  0x1d   : > { %s622_s25 = scalar_lea.vmem (!%p566_p9), [#allocation2], %s4344_s28 }
  0x1e   : > { %s4281_s3 = sshll.u32 (!%p566_p9), %s622_s25, 4  ;;  %s6981_s3 = int_to_ptr.vmem [resolvable:$true] %s4281_s3 }
  0x1f   : > { %v5307_v15 = vld [vmem:[%s7068_s21 + $0x64] ss:$8 sps:$4 sm:$0xff] (!%p566_p9)   ;;  %v5305_v19 = vld [vmem:[%s7068_s21 + $0x60] ss:$8 sps:$4 sm:$0xff] (!%p566_p9)   ;;  %v5310_v20 = vld [vmem:[%s7068_s21 + $0x74] ss:$8 sps:$4 sm:$0xff] (!%p566_p9)  }
  0x20   : > { %s624_s30 = scalar_select %p623_p10, %s5841_s2, 1  ;;  %v5308_v21 = vld [vmem:[%s7068_s21 + $0x70] ss:$8 sps:$4 sm:$0xff]   ;;  %v5313_v22 = vld [vmem:[%s7068_s21 + $0x84] ss:$8 sps:$4 sm:$0xff]  }
  0x21   : > { %v5311_v25 = vld [vmem:[%s7068_s21 + $0x80] ss:$8 sps:$4 sm:$0xff]   ;;  %v5316_v26 = vld [vmem:[%s7068_s21 + $0x94] ss:$8 sps:$4 sm:$0xff]   ;;  %v5314_v27 = vld [vmem:[%s7068_s21 + $0x90] ss:$8 sps:$4 sm:$0xff]  }
  0x22   : > { %s5252_s0 = smul.u32 72, %s624_s30  ;;  %v5319_v28 = vld [vmem:[%s7068_s21 + $0xa4] ss:$8 sps:$4 sm:$0xff]   ;;  %v5317_v31 = vld [vmem:[%s7068_s21 + $0xa0] ss:$8 sps:$4 sm:$0xff]   ;;  %s7072_s30 = smov %s7071_s24 }
  0x23   : > { %v5322_v36 = vld [vmem:[%s7068_s21 + $0xb4] ss:$8 sps:$4 sm:$0xff]   ;;  %v5320_v37 = vld [vmem:[%s7068_s21 + $0xb0] ss:$8 sps:$4 sm:$0xff]   ;;  %v5325_v39 = vld [vmem:[%s7068_s21 + $0x4] ss:$8 sps:$4 sm:$0xff]  }
  0x24   : > { %s627_s27 = scalar_lea.vmem %s7067_s26, %s5252_s0  ;;  %v5323_v45 = vld [vmem:[%s7068_s21] ss:$8 sps:$4 sm:$0xff]   ;;  %v5328_v49 = vld [vmem:[%s7068_s21 + $0x14] ss:$8 sps:$4 sm:$0xff]   ;;  %v5326_v52 = vld [vmem:[%s7068_s21 + $0x10] ss:$8 sps:$4 sm:$0xff]  }
  0x25   : > { %v629_v1 = vld [vmem:[%s627_s27] sm:$0xff]  ;;  %v630_v2 = vld [vmem:[%s627_s27 + $0x8] sm:$0xff]  ;;  %v631_v3 = vld [vmem:[%s627_s27 + $0x10] sm:$0xff]  ;;  %s5647_s0 = scalar_lea.vmem %s6981_s3, 32 }
  0x26   : > { %v5879_v4 = vpack.c.bf16 %v630_v2, %v629_v1  ;;  %v632_v5 = vld [vmem:[%s627_s27 + $0x18] sm:$0xff]  ;;  %v633_v7 = vld [vmem:[%s627_s27 + $0x20] sm:$0xff]  ;;  %v634_v8 = vld [vmem:[%s627_s27 + $0x28] sm:$0xff]  ;;  %p5648_p11 = scmp.ne.s32.totalorder %s6981_s3, %s5647_s0 }
  0x27   : > { %v5882_v6 = vpack.c.bf16 %v632_v5, %v631_v3  ;;  %v5888_v9 = vpack.c.bf16 %v634_v8, %v633_v7  ;;  %v635_v10 = vld [vmem:[%s627_s27 + $0x30] sm:$0xff]  ;;  %v636_v11 = vld [vmem:[%s627_s27 + $0x38] sm:$0xff]  ;;  %v637_v12 = vld [vmem:[%s627_s27 + $0x40] sm:$0xf]  ;;  %s7069_s27 = sld [smem:[#allocation12_spill]] }
  0x28   : > { %4933 = vmatpush3.bf16.msra.mxu0 %v5879_v4  ;;  %4963 = vmatpush3.bf16.msra.mxu1 %v5879_v4  ;;  %v5894_v13 = vpack.c.bf16 %v636_v11, %v635_v10  ;;  %v5898_v14 = vpack.c.bf16 %v637_v12, %v637_v12  ;;  %v5331_v53 = vld [vmem:[%s7068_s21 + $0x24] ss:$8 sps:$4 sm:$0xff]   ;;  %v5329_v59 = vld [vmem:[%s7068_s21 + $0x20] ss:$8 sps:$4 sm:$0xff]   ;;  %v5334_v63 = vld [vmem:[%s7068_s21 + $0x34] ss:$8 sps:$4 sm:$0xff]   ;;  %p5649_p12 = pnand %p5648_p11, %p5858_p5 }
  0x29   : > { %4934 = vmatprep.subr.bf16.mxu0 %v5711_v0  ;;  %4964 = vmatprep.subr.bf16.mxu1 %v5711_v0  ;;  %v5332_v3 = vld [vmem:[%s7068_s21 + $0x30] ss:$8 sps:$4 sm:$0xff]   ;;  %v5337_v5 = vld [vmem:[%s7068_s21 + $0x44] ss:$8 sps:$4 sm:$0xff]  }
  0x2a   : > { %v693_v16 = vsel %vm691_vm1, %v5898_v14, 0  ;;  %p5650_p13 = pneg %p5649_p12 }
  0x2c   : > { %4935 = vmatpush3.bf16.msra.mxu0 %v5882_v6  ;;  %4965 = vmatpush3.bf16.msra.mxu1 %v5882_v6 }
  0x2d   : > { %4936 = vmatprep.subr.bf16.mxu0 %v5711_v0  ;;  %4966 = vmatprep.subr.bf16.mxu1 %v5711_v0  ;;  %v5295_v17 = vld [vmem:[%s7069_s27] sm:$0xff]   ;;  %v5296_v23 = vld [vmem:[%s7069_s27 + $0x8] sm:$0xff]   ;;  %v5297_v29 = vld [vmem:[%s7069_s27 + $0x10] sm:$0xff]  }
  0x2e   : > { %v5300_v18 = vld [vmem:[%s7069_s27 + $0x24] sm:$0xff]   ;;  %v5301_v24 = vld [vmem:[%s7069_s27 + $0x2c] sm:$0xff]   ;;  %v5302_v30 = vld [vmem:[%s7069_s27 + $0x34] sm:$0xff]  }
  0x2f   : > { %v5298_v32 = vld [vmem:[%s7069_s27 + $0x18] sm:$0xff]   ;;  %v5299_v34 = vld [vmem:[%s7069_s27 + $0x20] ss:$0 sps:$4 sm:$0x33]  }
  0x30   : > { %4937 = vmatpush3.bf16.msra.mxu0 %v5888_v9  ;;  %4967 = vmatpush3.bf16.msra.mxu1 %v5888_v9  ;;  %v5303_v33 = vld [vmem:[%s7069_s27 + $0x3c] sm:$0xff]   ;;  %v5304_v35 = vld [vmem:[%s7069_s27 + $0x44] ss:$0 sps:$4 sm:$0x33]  }
  0x31   : > { %4938 = vmatprep.subr.bf16.mxu0 %v5711_v0  ;;  %4968 = vmatprep.subr.bf16.mxu1 %v5711_v0 }
  0x34   : > { %4939 = vmatpush3.bf16.msra.mxu0 %v5894_v13  ;;  %4969 = vmatpush3.bf16.msra.mxu1 %v5894_v13 }
  0x35   : > { %4940 = vmatprep.subr.bf16.mxu0 %v5711_v0  ;;  %4970 = vmatprep.subr.bf16.mxu1 %v5711_v0 }
  0x38   : > { %4941 = vmatpush3.bf16.msra.mxu0 %v693_v16  ;;  %4971 = vmatpush3.bf16.msra.mxu1 %v693_v16 }
  0x39   : > { %998 = vmatprep.subr.bf16.mxu0 %v5307_v15  ;;  %4992 = vmatprep.subr.bf16.mxu1 %v5711_v0  ;;  %v5335_v15 = vld [vmem:[%s7068_s21 + $0x40] ss:$8 sps:$4 sm:$0xff]  }
  0x3b   : > { %4943 = vmatmul.mubr.msk.bf16.vlgmr.msra.gmra.mrb[0].mxu0 %vm675_vm2, %v5295_v17  ;;  %4973 = vmatmul.mubr.msk.bf16.vlgmr.msra.gmra.mrb[0].mxu1 %vm675_vm2, %v5300_v18 }
  0x3c   : > { %4946 = vmatprep.mubr.msk.bf16.mxu0 %vm5712_vm0, %v5711_v0  ;;  %4976 = vmatprep.mubr.msk.bf16.mxu1 %vm5712_vm0, %v5711_v0 }
  0x3d   : > { %999 = vmatpush1.bf16.msra.mxu0 %v5305_v19  ;;  %v5340_v19 = vld [vmem:[%s7068_s21 + $0x54] ss:$8 sps:$4 sm:$0xff]  }
  0x3e   : > { %1000 = vmatprep.subr.bf16.mxu0 %v5310_v20 }
  0x41   : > { %1001 = vmatpush1.bf16.msra.mxu0 %v5308_v21 }
  0x42   : > { %1002 = vmatprep.subr.bf16.mxu0 %v5313_v22  ;;  %v5338_v22 = vld [vmem:[%s7068_s21 + $0x50] ss:$8 sps:$4 sm:$0xff]  }
  0x43   : > { %4947 = vmatmul.mubr.msk.bf16.gmra.mrb[4].mxu0 %vm675_vm2, %v5296_v23  ;;  %4977 = vmatmul.mubr.msk.bf16.gmra.mrb[4].mxu1 %vm675_vm2, %v5301_v24  ;;  %v5343_v23 = vld [vmem:[%s7068_s21 + $0xc4] ss:$8 sps:$4 sm:$0xff]  }
  0x44   : > { %4950 = vmatprep.mubr.msk.bf16.mxu0 %vm5712_vm0, %v5711_v0  ;;  %4980 = vmatprep.mubr.msk.bf16.mxu1 %vm5712_vm0, %v5711_v0 }
  0x45   : > { %1003 = vmatpush1.bf16.msra.mxu0 %v5311_v25 }
  0x46   : > { %1004 = vmatprep.subr.bf16.mxu0 %v5316_v26 }
  0x49   : > { %1005 = vmatpush1.bf16.msra.mxu0 %v5314_v27 }
  0x4a   : > { %1006 = vmatprep.subr.bf16.mxu0 %v5319_v28 }
  0x4b   : > { %4951 = vmatmul.mubr.msk.bf16.gmra.mrb[8].mxu0 %vm675_vm2, %v5297_v29  ;;  %4981 = vmatmul.mubr.msk.bf16.gmra.mrb[8].mxu1 %vm675_vm2, %v5302_v30 }
  0x4c   : > { %4954 = vmatprep.mubr.msk.bf16.mxu0 %vm5712_vm0, %v5711_v0  ;;  %4984 = vmatprep.mubr.msk.bf16.mxu1 %vm5712_vm0, %v5711_v0 }
  0x4d   : > { %1007 = vmatpush1.bf16.msra.mxu0 %v5317_v31 }
  0x4e   : > { %1008 = vmatprep.subr.bf16.mxu0 %v5322_v36 }
  0x51   : > { %1009 = vmatpush1.bf16.msra.mxu0 %v5320_v37 }
  0x52   : > { %1153 = vmatprep.subr.bf16.mxu0 %v5325_v39 }
  0x53   : > { %4955 = vmatmul.mubr.msk.bf16.gmra.mrb[12].mxu0 %vm675_vm2, %v5298_v32  ;;  %4985 = vmatmul.mubr.msk.bf16.gmra.mrb[12].mxu1 %vm675_vm2, %v5303_v33 }
  0x54   : > { %4958 = vmatprep.mubr.msk.bf16.mxu0 %vm5712_vm0, %v5711_v0  ;;  %4988 = vmatprep.mubr.msk.bf16.mxu1 %vm5712_vm0, %v5711_v0 }
  0x5b   : > { %4959 = vmatmul.mubr.msk.bf16.gmra.mrb[16].mxu0 %vm675_vm2, %v5299_v34  ;;  %4989 = vmatmul.mubr.msk.bf16.gmra.mrb[16].mxu1 %vm675_vm2, %v5304_v35 }
  0x5c   : > { %5002 = vmatprep.mubr.msk.bf16.mxu1 %vm5712_vm0, %v5711_v0  ;;  %1030 = vmatprep.mubr.bf16.mxu0 %v5713_v38 }
 0x10e   : > { %v729_v40 = vpop.f32.mrb[0].mxu0  ;;  %v6006_v41 = vpop.f32.mrb[0].mxu1 }
 0x10f   : > { %v4944_v42 = vpop.f32.mrb[1].mxu0  ;;  %v4974_v43 = vpop.f32.mrb[1].mxu1 }
 0x110   : > { %v732_v44 = vpop.f32.mrb[2].mxu0  ;;  %v6011_v46 = vpop.f32.mrb[2].mxu1 }
 0x111   : > { %v767_v47 = vpack.c.bf16 %v732_v44, %v729_v40  ;;  %v4945_v48 = vpop.f32.mrb[3].mxu0  ;;  %v892_v50 = vpack.c.bf16 %v6011_v46, %v6006_v41  ;;  %v4975_v51 = vpop.f32.mrb[3].mxu1  ;;  %v6142_v41 = vld [vmem:[%s7070_s29] ss:$0 sm:$0xff] }
 0x112   : > { %v5344_v48 = vld [vmem:[%s7068_s21 + $0xd0] ss:$8 sps:$4 sm:$0xff]   ;;  %v5347_v51 = vld [vmem:[%s7068_s21 + $0xe0] ss:$8 sps:$4 sm:$0xff]  }
 0x113   : > { %4399 = vmatmul.mubr.msk.bf16.vlgmr.msra.gmra.mrb[20].mxu0 %vm982_vm3, %v767_v47  ;;  %v5346_v47 = vld [vmem:[%s7068_s21 + $0xd4] ss:$8 sps:$4 sm:$0xff]  }
 0x114   : > { %1040 = vmatprep.mubr.bf16.mxu0 %v5713_v38  ;;  %1154 = vmatpush1.bf16.msra.mxu0 %v5323_v45  ;;  %v5341_v45 = vld [vmem:[%s7068_s21 + $0xc0] ss:$8 sps:$4 sm:$0xff]  }
 0x115   : > { %1155 = vmatprep.subr.bf16.mxu0 %v5328_v49  ;;  %v5349_v49 = vld [vmem:[%s7068_s21 + $0xe4] ss:$8 sps:$4 sm:$0xff]  }
 0x116   : > { %v737_v54 = vpop.f32.mrb[4].mxu0  ;;  %v6026_v55 = vpop.f32.mrb[4].mxu1 }
 0x117   : > { %v4948_v56 = vpop.f32.mrb[5].mxu0  ;;  %v4978_v57 = vpop.f32.mrb[5].mxu1 }
 0x118   : > { %v740_v58 = vpop.f32.mrb[6].mxu0  ;;  %1156 = vmatpush1.bf16.msra.mxu0 %v5326_v52  ;;  %v6031_v60 = vpop.f32.mrb[6].mxu1  ;;  %v5350_v52 = vld [vmem:[%s7068_s21 + $0xf0] ss:$8 sps:$4 sm:$0xff]  }
 0x119   : > { %v768_v61 = vpack.c.bf16 %v740_v58, %v737_v54  ;;  %v4949_v62 = vpop.f32.mrb[7].mxu0  ;;  %1157 = vmatprep.subr.bf16.mxu0 %v5331_v53  ;;  %v893_v1 = vpack.c.bf16 %v6031_v60, %v6026_v55  ;;  %v4979_v2 = vpop.f32.mrb[7].mxu1  ;;  %v5355_v53 = vld [vmem:[%s7068_s21 + $0x104] ss:$8 sps:$4 sm:$0xff]   ;;  %v5353_v54 = vld [vmem:[%s7068_s21 + $0x100] ss:$8 sps:$4 sm:$0xff]  }
 0x11a   : > { %v5356_v56 = vld [vmem:[%s7068_s21 + $0x110] ss:$8 sps:$4 sm:$0xff]  }
 0x11b   : > { %4400 = vmatmul.mubr.msk.bf16.gmra.mrb[24].mxu0 %vm982_vm3, %v768_v61 }
 0x11c   : > { %1050 = vmatprep.mubr.bf16.mxu0 %v5713_v38  ;;  %1158 = vmatpush1.bf16.msra.mxu0 %v5329_v59 }
 0x11d   : > { %1159 = vmatprep.subr.bf16.mxu0 %v5334_v63 }
 0x11e   : > { %v745_v7 = vpop.f32.mrb[8].mxu0  ;;  %v6046_v8 = vpop.f32.mrb[8].mxu1 }
 0x11f   : > { %v4952_v10 = vpop.f32.mrb[9].mxu0  ;;  %v4982_v11 = vpop.f32.mrb[9].mxu1 }
 0x120   : > { %v748_v12 = vpop.f32.mrb[10].mxu0  ;;  %1160 = vmatpush1.bf16.msra.mxu0 %v5332_v3  ;;  %v6051_v16 = vpop.f32.mrb[10].mxu1 }
 0x121   : > { %v769_v17 = vpack.c.bf16 %v748_v12, %v745_v7  ;;  %v4953_v18 = vpop.f32.mrb[11].mxu0  ;;  %1161 = vmatprep.subr.bf16.mxu0 %v5337_v5  ;;  %v894_v20 = vpack.c.bf16 %v6051_v16, %v6046_v8  ;;  %v4983_v21 = vpop.f32.mrb[11].mxu1 }
 0x123   : > { %4401 = vmatmul.mubr.msk.bf16.gmra.mrb[28].mxu0 %vm982_vm3, %v769_v17 }
 0x124   : > { %1060 = vmatprep.mubr.bf16.mxu0 %v5713_v38  ;;  %1162 = vmatpush1.bf16.msra.mxu0 %v5335_v15 }
 0x125   : > { %1163 = vmatprep.subr.bf16.mxu0 %v5340_v19 }
 0x126   : > { %v753_v24 = vpop.f32.mrb[12].mxu0  ;;  %v6066_v25 = vpop.f32.mrb[12].mxu1 }
 0x127   : > { %v4956_v26 = vpop.f32.mrb[13].mxu0  ;;  %v4986_v27 = vpop.f32.mrb[13].mxu1 }
 0x128   : > { %v756_v28 = vpop.f32.mrb[14].mxu0  ;;  %1164 = vmatpush1.bf16.msra.mxu0 %v5338_v22  ;;  %v881_v29 = vpop.f32.mrb[14].mxu1 }
 0x129   : > { %v770_v30 = vpack.c.bf16 %v756_v28, %v753_v24  ;;  %v4957_v31 = vpop.f32.mrb[15].mxu0  ;;  %1322 = vmatprep.subr.bf16.mxu0 %v5343_v23  ;;  %v895_v32 = vpack.c.bf16 %v881_v29, %v6066_v25  ;;  %v4987_v33 = vpop.f32.mrb[15].mxu1 }
 0x12b   : > { %4402 = vmatmul.mubr.msk.bf16.gmra.mrb[32].mxu0 %vm982_vm3, %v770_v30 }
 0x12c   : > { %1070 = vmatprep.mubr.bf16.mxu0 %v5713_v38 }
 0x12e   : > { %v761_v34 = vpop.f32.mrb[16].mxu0  ;;  %v886_v35 = vpop.f32.mrb[16].mxu1 }
 0x12f   : > { %v771_v36 = vpack.c.bf16 %v761_v34, %v761_v34  ;;  %v4960_v37 = vpop.f32.mrb[17].mxu0  ;;  %v4990_v39 = vpop.f32.mrb[17].mxu1 }
 0x130   : > { %v764_v40 = vpop.f32.mrb[18].mxu0  ;;  %v889_v42 = vpop.f32.mrb[18].mxu1 }
 0x131   : > { %v4961_v43 = vpop.f32.mrb[19].mxu0  ;;  %v4991_v44 = vpop.f32.mrb[19].mxu1 }
 0x133   : > { %4403 = vmatmul.mubr.msk.bf16.gmra.mrb[36].mxu0 %vm982_vm3, %v771_v36 }
 0x134   : > { %1185 = vmatprep.mubr.bf16.mxu0 %v5713_v38 }
 0x13b   : > { %4416 = vmatmul.mubr.msk.bf16.vlgmr.msra.gmra.mrb[20].mxu0 %vm982_vm3, %v5879_v4  ;;  %v5352_v4 = vld [vmem:[%s7068_s21 + $0xf4] ss:$8 sps:$4 sm:$0xff]  }
 0x13c   : > { %1195 = vmatprep.mubr.bf16.mxu0 %v5713_v38  ;;  %1323 = vmatpush1.bf16.msra.mxu0 %v5341_v45 }
 0x13d   : > { %1324 = vmatprep.subr.bf16.mxu0 %v5346_v47 }
 0x140   : > { %1325 = vmatpush1.bf16.msra.mxu0 %v5344_v48 }
 0x141   : > { %1326 = vmatprep.subr.bf16.mxu0 %v5349_v49 }
 0x143   : > { %4417 = vmatmul.mubr.msk.bf16.gmra.mrb[24].mxu0 %vm982_vm3, %v5882_v6  ;;  %v5358_v6 = vld [vmem:[%s7068_s21 + $0x114] ss:$8 sps:$4 sm:$0xff]   ;;  %s4818_s21 = sshll.u32 %s5841_s2, 5  ;;  %s5714_s2 = smov [#allocation2]  }
 0x144   : > { %1205 = vmatprep.mubr.bf16.mxu0 %v5713_v38  ;;  %1327 = vmatpush1.bf16.msra.mxu0 %v5347_v51  ;;  %s6979_s1 = scalar_lea.hbm %s7042_s20, %s4818_s21  ;;  %s5651_s28 = sshll.u32 %s5714_s2, 4  ;;  %s5652_s28 = int_to_ptr.vmem [resolvable:$false] %s5651_s28 }
 0x145   : > { %1328 = vmatprep.subr.bf16.mxu0 %v5352_v4  ;;  %p5654_p0 = scmp.lt.s32.totalorder %s6981_s3, %s5652_s28 }
 0x148   : > { %1329 = vmatpush1.bf16.msra.mxu0 %v5350_v52 }
 0x149   : > { %1330 = vmatprep.subr.bf16.mxu0 %v5355_v53 }
 0x14b   : > { %4418 = vmatmul.mubr.msk.bf16.gmra.mrb[28].mxu0 %vm982_vm3, %v5888_v9  ;;  %v896_v9 = vpack.c.bf16 %v886_v35, %v886_v35 }
 0x14c   : > { %1215 = vmatprep.mubr.bf16.mxu0 %v5713_v38  ;;  %1331 = vmatpush1.bf16.msra.mxu0 %v5353_v54 }
 0x14d   : > { %1332 = vmatprep.subr.bf16.mxu0 %v5358_v6 }
 0x150   : > { %1333 = vmatpush1.bf16.msra.mxu0 %v5356_v56 }
 0x153   : > { %4419 = vmatmul.mubr.msk.bf16.gmra.mrb[32].mxu0 %vm982_vm3, %v5894_v13 }
 0x154   : > { %1225 = vmatprep.mubr.bf16.mxu0 %v5713_v38 }
 0x15b   : > { %4420 = vmatmul.mubr.msk.bf16.gmra.mrb[36].mxu0 %vm982_vm3, %v5898_v14 }
 0x15c   : > { %1354 = vmatprep.mubr.bf16.mxu0 %v5713_v38 }
 0x163   : > { %4445 = vmatmul.mubr.msk.bf16.vlgmr.msra.gmra.mrb[20].mxu0 %vm982_vm3, %v892_v50 }
 0x164   : > { %1364 = vmatprep.mubr.bf16.mxu0 %v5713_v38 }
 0x16b   : > { %4446 = vmatmul.mubr.msk.bf16.gmra.mrb[24].mxu0 %vm982_vm3, %v893_v1 }
 0x16c   : > { %1374 = vmatprep.mubr.bf16.mxu0 %v5713_v38 }
 0x173   : > { %4447 = vmatmul.mubr.msk.bf16.gmra.mrb[28].mxu0 %vm982_vm3, %v894_v20 }
 0x174   : > { %1384 = vmatprep.mubr.bf16.mxu0 %v5713_v38 }
 0x17b   : > { %4448 = vmatmul.mubr.msk.bf16.gmra.mrb[32].mxu0 %vm982_vm3, %v895_v32 }
 0x17c   : > { %1394 = vmatprep.mubr.bf16.mxu0 %v5713_v38 }
 0x183   : > { %4449 = vmatmul.mubr.msk.bf16.gmra.mrb[36].mxu0 %vm982_vm3, %v896_v9 }
 0x236   : > { %v1356_v13 = vpop.f32.mrb[20].mxu0 }
 0x237   : > { %v1358_v14 = vpop.f32.mrb[21].mxu0 }
 0x238   : > { %v1421_v46 = vmax.f32 %v1356_v13, %v1358_v14  ;;  %v1360_v50 = vpop.f32.mrb[22].mxu0  ;;  %v5359_v14 = vld [vmem:[%s7071_s24] sm:$0xff]   ;;  %s4268_s24 = scalar_lea.sflag [#allocation3], %s620_s23 }
 0x239   : > { %v1362_v55 = vpop.f32.mrb[23].mxu0 }
 0x23a   : > { %v1437_v57 = vadd.f32 %v6142_v41, %v1421_v46  ;;  %v1422_v58 = vmax.f32 %v1360_v50, %v1362_v55  ;;  %v5361_v46 = vld [vmem:[%s7072_s30 + $0x10] ss:$0 sps:$4 sm:$0x33]   ;;  %v5362_v50 = vld [vmem:[%s7072_s30 + $0x14] sm:$0xff]   ;;  %v5363_v55 = vld [vmem:[%s7072_s30 + $0x1c] sm:$0xff]  }
 0x23c   : > { %v1455_v59 = vmul.f32 0.01, %v1437_v57  ;;  %v1438_v60 = vadd.f32 %v6142_v41, %v1422_v58  ;;  %vm1446_vm4 = vcmp.ge.f32.partialorder %v1437_v57, 0.0 }
 0x23e   : > { %vm1447_vm5 = vcmp.ge.f32.partialorder %v1438_v60, 0.0  ;;  %v1456_v61 = vmul.f32 0.01, %v1438_v60  ;;  %v1366_v62 = vpop.f32.mrb[24].mxu0  ;;  %v1464_v1 = vsel %vm1446_vm4, %v1437_v57, %v1455_v59 }
 0x23f   : > { %v1368_v63 = vpop.f32.mrb[25].mxu0  ;;  %v5364_v57 = vld [vmem:[%s7072_s30 + $0x24] ss:$0 sps:$4 sm:$0x33]  }
 0x240   : > { %v1465_v2 = vsel %vm1447_vm5, %v1438_v60, %v1456_v61  ;;  %v1423_v3 = vmax.f32 %v1366_v62, %v1368_v63  ;;  %v1370_v5 = vpop.f32.mrb[26].mxu0  ;;  %vm2501_vm5 = vcmask 162816  }
 0x241   : > { %v1372_v7 = vpop.f32.mrb[27].mxu0  ;;  %v6146_v8 = vpack.c.bf16 %v1465_v2, %v1464_v1 }
 0x242   : > { %v1439_v10 = vadd.f32 %v6142_v41, %v1423_v3  ;;  %v1424_v11 = vmax.f32 %v1370_v5, %v1372_v7 }
 0x243   : > { %4993 = vmatpush3.bf16.msra.mxu1 %v6146_v8 }
 0x244   : > { %v1457_v12 = vmul.f32 0.01, %v1439_v10  ;;  %v1440_v15 = vadd.f32 %v6142_v41, %v1424_v11  ;;  %4994 = vmatprep.subr.bf16.mxu1 %v5711_v0  ;;  %vm1448_vm6 = vcmp.ge.f32.partialorder %v1439_v10, 0.0 }
 0x246   : > { %vm1449_vm7 = vcmp.ge.f32.partialorder %v1440_v15, 0.0  ;;  %v1458_v16 = vmul.f32 0.01, %v1440_v15  ;;  %v1376_v17 = vpop.f32.mrb[28].mxu0  ;;  %v1466_v19 = vsel %vm1448_vm6, %v1439_v10, %v1457_v12 }
 0x247   : > { %v1378_v18 = vpop.f32.mrb[29].mxu0 }
 0x248   : > { %v1467_v20 = vsel %vm1449_vm7, %v1440_v15, %v1458_v16  ;;  %v1425_v21 = vmax.f32 %v1376_v17, %v1378_v18  ;;  %v1380_v22 = vpop.f32.mrb[30].mxu0 }
 0x249   : > { %v1382_v23 = vpop.f32.mrb[31].mxu0  ;;  %v1474_v24 = vpack.c.bf16 %v1467_v20, %v1466_v19 }
 0x24a   : > { %v1441_v25 = vadd.f32 %v6142_v41, %v1425_v21  ;;  %v1426_v26 = vmax.f32 %v1380_v22, %v1382_v23 }
 0x24b   : > { %4995 = vmatpush3.bf16.msra.mxu1 %v1474_v24 }
 0x24c   : > { %v1459_v27 = vmul.f32 0.01, %v1441_v25  ;;  %v1442_v28 = vadd.f32 %v6142_v41, %v1426_v26  ;;  %4996 = vmatprep.subr.bf16.mxu1 %v5711_v0  ;;  %vm1450_vm8 = vcmp.ge.f32.partialorder %v1441_v25, 0.0 }
 0x24e   : > { %vm1451_vm9 = vcmp.ge.f32.partialorder %v1442_v28, 0.0  ;;  %v1460_v29 = vmul.f32 0.01, %v1442_v28  ;;  %v1386_v30 = vpop.f32.mrb[32].mxu0  ;;  %v1468_v32 = vsel %vm1450_vm8, %v1441_v25, %v1459_v27 }
 0x24f   : > { %v1388_v31 = vpop.f32.mrb[33].mxu0 }
 0x250   : > { %v1469_v33 = vsel %vm1451_vm9, %v1442_v28, %v1460_v29  ;;  %v1427_v34 = vmax.f32 %v1386_v30, %v1388_v31  ;;  %v1390_v35 = vpop.f32.mrb[34].mxu0  ;;  %vm3197_vm9 = vcmask 64512  }
 0x251   : > { %v1392_v36 = vpop.f32.mrb[35].mxu0  ;;  %v1475_v37 = vpack.c.bf16 %v1469_v33, %v1468_v32  ;;  %v5365_v33 = vld [vmem:[%s7073_s5] sm:$0xff]  }
 0x252   : > { %v1443_v39 = vadd.f32 %v6142_v41, %v1427_v34  ;;  %v1428_v40 = vmax.f32 %v1390_v35, %v1392_v36  ;;  %v5366_v34 = vld [vmem:[%s7073_s5 + $0x8] sm:$0xff]   ;;  %v5367_v36 = vld [vmem:[%s7073_s5 + $0x10] ss:$0 sps:$4 sm:$0x33]  }
 0x253   : > { %4997 = vmatpush3.bf16.msra.mxu1 %v1475_v37  ;;  %v5373_v35 = vld [vmem:[%s7028_s6 + $0x84] ss:$8 sps:$4 sm:$0xff]  }
 0x254   : > { %v1461_v42 = vmul.f32 0.01, %v1443_v39  ;;  %v1444_v43 = vadd.f32 %v6142_v41, %v1428_v40  ;;  %4998 = vmatprep.subr.bf16.mxu1 %v5711_v0  ;;  %vm1452_vm10 = vcmp.ge.f32.partialorder %v1443_v39, 0.0  ;;  %v5376_v40 = vld [vmem:[%s7028_s6 + $0x94] ss:$8 sps:$4 sm:$0xff]  }
 0x256   : > { %vm1453_vm11 = vcmp.ge.f32.partialorder %v1444_v43, 0.0  ;;  %v1462_v44 = vmul.f32 0.01, %v1444_v43  ;;  %v1396_v45 = vpop.f32.mrb[36].mxu0  ;;  %v1470_v48 = vsel %vm1452_vm10, %v1443_v39, %v1461_v42  ;;  %v5371_v39 = vld [vmem:[%s7028_s6 + $0x80] ss:$8 sps:$4 sm:$0xff]  }
 0x257   : > { %v1398_v47 = vpop.f32.mrb[37].mxu0  ;;  %v5374_v42 = vld [vmem:[%s7028_s6 + $0x90] ss:$8 sps:$4 sm:$0xff]  }
 0x258   : > { %v1471_v49 = vsel %vm1453_vm11, %v1444_v43, %v1462_v44  ;;  %v1429_v51 = vmax.f32 %v1396_v45, %v1398_v47  ;;  %v1400_v4 = vpop.f32.mrb[38].mxu0  ;;  %v5379_v43 = vld [vmem:[%s7028_s6 + $0xa4] ss:$8 sps:$4 sm:$0xff]   ;;  %v5369_v44 = vld [vmem:[%s7073_s5 + $0x1c] sm:$0xff]  }
 0x259   : > { %v1401_v52 = vpop.f32.mrb[39].mxu0  ;;  %v1476_v53 = vpack.c.bf16 %v1471_v49, %v1470_v48  ;;  %v5377_v45 = vld [vmem:[%s7028_s6 + $0xa0] ss:$8 sps:$4 sm:$0xff]   ;;  %v5382_v47 = vld [vmem:[%s7028_s6 + $0xb4] ss:$8 sps:$4 sm:$0xff]  }
 0x25a   : > { %v1445_v54 = vadd.f32 %v6142_v41, %v1429_v51  ;;  %v5360_v41 = vld [vmem:[%s7072_s30 + $0x8] sm:$0xff]   ;;  %v5380_v48 = vld [vmem:[%s7028_s6 + $0xb0] ss:$8 sps:$4 sm:$0xff]   ;;  %v5370_v51 = vld [vmem:[%s7073_s5 + $0x24] ss:$0 sps:$4 sm:$0x33]  }
 0x25b   : > { %4999 = vmatpush3.bf16.msra.mxu1 %v1476_v53  ;;  %v5385_v49 = vld [vmem:[%s7028_s6 + $0xc4] ss:$8 sps:$4 sm:$0xff]   ;;  %v5383_v4 = vld [vmem:[%s7028_s6 + $0xc0] ss:$8 sps:$4 sm:$0xff]   ;;  %v5388_v52 = vld [vmem:[%s7028_s6 + $0xd4] ss:$8 sps:$4 sm:$0xff]  }
 0x25c   : > { %vm1454_vm12 = vcmp.ge.f32.partialorder %v1445_v54, 0.0  ;;  %v1463_v6 = vmul.f32 0.01, %v1445_v54  ;;  %5000 = vmatprep.subr.bf16.mxu1 %v5711_v0 }
 0x25e   : > { %v1472_v56 = vsel %vm1454_vm12, %v1445_v54, %v1463_v6  ;;  %v5391_v54 = vld [vmem:[%s7028_s6 + $0xe4] ss:$8 sps:$4 sm:$0xff]   ;;  %v5389_v6 = vld [vmem:[%s7028_s6 + $0xe0] ss:$8 sps:$4 sm:$0xff]   ;;  %vm4251_vm12 = vcmask 74752  }
 0x25f   : > { %v1477_v9 = vpack.c.bf16 %v1472_v56, %v1472_v56  ;;  %v5394_v56 = vld [vmem:[%s7028_s6 + $0xf4] ss:$8 sps:$4 sm:$0xff]  }
 0x261   : > { %v1506_v13 = vsel %vm691_vm1, %v1477_v9, 0  ;;  %v5392_v9 = vld [vmem:[%s7028_s6 + $0xf0] ss:$8 sps:$4 sm:$0xff]  }
 0x262   : > { %5001 = vmatpush3.bf16.msra.mxu1 %v1506_v13 }
 0x263   : > { %5014 = vmatprep.subr.bf16.mxu1 %v5711_v0 }
 0x265   : > { %5003 = vmatmul.mubr.msk.bf16.vlgmr.msra.gmra.mrb[20].mxu1 %vm675_vm2, %v5359_v14 }
 0x266   : > { %5015 = vmatpush3.bf16.msra.mxu1 %v6146_v8  ;;  %5006 = vmatprep.mubr.msk.bf16.mxu1 %vm5712_vm0, %v5711_v0 }
 0x267   : > { %5016 = vmatprep.subr.bf16.mxu1 %v5711_v0 }
 0x26a   : > { %5017 = vmatpush3.bf16.msra.mxu1 %v1474_v24 }
 0x26b   : > { %5018 = vmatprep.subr.bf16.mxu1 %v5711_v0 }
 0x26d   : > { %5007 = vmatmul.mubr.msk.bf16.gmra.mrb[24].mxu1 %vm675_vm2, %v5360_v41 }
 0x26e   : > { %5019 = vmatpush3.bf16.msra.mxu1 %v1475_v37  ;;  %5010 = vmatprep.mubr.msk.bf16.mxu1 %vm5712_vm0, %v5711_v0  ;;  %v5368_v37 = vld [vmem:[%s7073_s5 + $0x14] sm:$0xff]   ;;  %s5653_s5 = scalar_lea.vmem %s5652_s28, 64 }
 0x26f   : > { %5020 = vmatprep.subr.bf16.mxu1 %v5711_v0  ;;  %p5655_p1 = scmp.lt.s32.totalorder %s5653_s5, %s5647_s0 }
 0x271   : > { %p5656_p2 = por %p5655_p1, %p5654_p0 }
 0x272   : > { %5021 = vmatpush3.bf16.msra.mxu1 %v1476_v53  ;;  %v5386_v53 = vld [vmem:[%s7028_s6 + $0xd0] ss:$8 sps:$4 sm:$0xff]  }
 0x273   : > { %5022 = vmatprep.subr.bf16.mxu1 %v5711_v0  ;;  %p5657_p3 = pnand %p5656_p2, %p5650_p13 }
 0x275   : > { %5011 = vmatmul.mubr.msk.bf16.gmra.mrb[28].mxu1 %vm675_vm2, %v5361_v46 }
 0x276   : > { %5023 = vmatpush3.bf16.msra.mxu1 %v1506_v13  ;;  %5024 = vmatprep.mubr.msk.bf16.mxu1 %vm5712_vm0, %v5711_v0  ;;  %v5397_v13 = vld [vmem:[%s7028_s6 + $0x4] ss:$8 sps:$4 sm:$0xff]  }
 0x277   : > { %5036 = vmatprep.subr.bf16.mxu1 %v5711_v0 }
 0x27d   : > { %5025 = vmatmul.mubr.msk.bf16.vlgmr.msra.gmra.mrb[32].mxu1 %vm675_vm2, %v5362_v50  ;;  %v5395_v50 = vld [vmem:[%s7028_s6] ss:$8 sps:$4 sm:$0xff]  }
 0x27e   : > { %5028 = vmatprep.mubr.msk.bf16.mxu1 %vm5712_vm0, %v5711_v0 }
 0x285   : > { %5029 = vmatmul.mubr.msk.bf16.gmra.mrb[36].mxu1 %vm675_vm2, %v5363_v55 }
 0x286   : > { %5032 = vmatprep.mubr.msk.bf16.mxu1 %vm5712_vm0, %v5711_v0 }
 0x28d   : > { %5033 = vmatmul.mubr.msk.bf16.gmra.mrb[40].mxu1 %vm675_vm2, %v5364_v57 }
 0x28e   : > { %5042 = vmatprep.mubr.msk.bf16.mxu1 %vm5712_vm0, %v5711_v0 }
 0x338   : > { %v1542_v58 = vpop.f32.mrb[20].mxu1 }
 0x339   : > { %v5004_v59 = vpop.f32.mrb[21].mxu1 }
 0x33a   : > { %v1545_v60 = vpop.f32.mrb[22].mxu1  ;;  %v5398_v59 = vld [vmem:[%s7028_s6 + $0x10] ss:$8 sps:$4 sm:$0xff]  }
 0x33b   : > { %v5005_v61 = vpop.f32.mrb[23].mxu1 }
 0x340   : > { %v1550_v62 = vpop.f32.mrb[24].mxu1 }
 0x341   : > { %v5008_v63 = vpop.f32.mrb[25].mxu1 }
 0x342   : > { %v1553_v1 = vpop.f32.mrb[26].mxu1  ;;  %v5401_v63 = vld [vmem:[%s7028_s6 + $0x20] ss:$8 sps:$4 sm:$0xff]  }
 0x343   : > { %v5009_v2 = vpop.f32.mrb[27].mxu1 }
 0x348   : > { %v1558_v3 = vpop.f32.mrb[28].mxu1 }
 0x349   : > { %v5012_v5 = vpop.f32.mrb[29].mxu1 }
 0x34a   : > { %v1561_v7 = vpop.f32.mrb[30].mxu1  ;;  %v5406_v5 = vld [vmem:[%s7028_s6 + $0x34] ss:$8 sps:$4 sm:$0xff]  }
 0x34b   : > { %v5013_v8 = vpop.f32.mrb[31].mxu1  ;;  %v5404_v7 = vld [vmem:[%s7028_s6 + $0x30] ss:$8 sps:$4 sm:$0xff]  }
 0x34c   : > { %v5409_v8 = vld [vmem:[%s7028_s6 + $0x44] ss:$8 sps:$4 sm:$0xff]  }
 0x350   : > { %v1626_v10 = vpop.f32.mrb[32].mxu1 }
 0x351   : > { %v1648_v11 = vmax.f32 %v1542_v58, %v1626_v10  ;;  %v5026_v12 = vpop.f32.mrb[33].mxu1  ;;  %v5400_v58 = vld [vmem:[%s7028_s6 + $0x14] ss:$8 sps:$4 sm:$0xff]  }
 0x352   : > { %v1629_v15 = vpop.f32.mrb[34].mxu1 }
 0x353   : > { %v1649_v16 = vmax.f32 %v1545_v60, %v1629_v15  ;;  %v5027_v17 = vpop.f32.mrb[35].mxu1  ;;  %v5403_v60 = vld [vmem:[%s7028_s6 + $0x24] ss:$8 sps:$4 sm:$0xff]   ;;  %v5407_v15 = vld [vmem:[%s7028_s6 + $0x40] ss:$8 sps:$4 sm:$0xff]  }
 0x354   : > { %v5412_v17 = vld [vmem:[%s7028_s6 + $0x54] ss:$8 sps:$4 sm:$0xff]  }
 0x355   : > { %v6204_v18 = vpack.c.bf16 %v1649_v16, %v1648_v11 }
 0x357   : > { %5037 = vmatpush3.bf16.msra.mxu1 %v6204_v18 }
 0x358   : > { %v1634_v19 = vpop.f32.mrb[36].mxu1  ;;  %5038 = vmatprep.subr.bf16.mxu1 %v5711_v0 }
 0x359   : > { %v1650_v20 = vmax.f32 %v1550_v62, %v1634_v19  ;;  %v5030_v21 = vpop.f32.mrb[37].mxu1 }
 0x35a   : > { %v1637_v22 = vpop.f32.mrb[38].mxu1  ;;  %v5415_v21 = vld [vmem:[%s7028_s6 + $0x64] ss:$8 sps:$4 sm:$0xff]  }
 0x35b   : > { %v1651_v23 = vmax.f32 %v1553_v1, %v1637_v22  ;;  %v5031_v24 = vpop.f32.mrb[39].mxu1 }
 0x35c   : > { %v5413_v24 = vld [vmem:[%s7028_s6 + $0x60] ss:$8 sps:$4 sm:$0xff]  }
 0x35d   : > { %v6208_v25 = vpack.c.bf16 %v1651_v23, %v1650_v20  ;;  %v5410_v20 = vld [vmem:[%s7028_s6 + $0x50] ss:$8 sps:$4 sm:$0xff]  }
 0x35f   : > { %5039 = vmatpush3.bf16.msra.mxu1 %v6208_v25 }
 0x360   : > { %v1642_v26 = vpop.f32.mrb[40].mxu1  ;;  %5040 = vmatprep.subr.bf16.mxu1 %v5711_v0 }
 0x361   : > { %v1652_v27 = vmax.f32 %v1558_v3, %v1642_v26  ;;  %v5034_v28 = vpop.f32.mrb[41].mxu1 }
 0x362   : > { %v1645_v29 = vpop.f32.mrb[42].mxu1 }
 0x363   : > { %v6212_v30 = vpack.c.bf16 %v1652_v27, %v1652_v27  ;;  %v5035_v31 = vpop.f32.mrb[43].mxu1  ;;  %v5418_v27 = vld [vmem:[%s7028_s6 + $0x74] ss:$8 sps:$4 sm:$0xff]  }
 0x364   : > { %v5416_v31 = vld [vmem:[%s7028_s6 + $0x70] ss:$8 sps:$4 sm:$0xff]  }
 0x365   : > { %v1685_v32 = vsel %vm691_vm1, %v6212_v30, 0 }
 0x366   : > { %5041 = vmatpush3.bf16.msra.mxu1 %v1685_v32 }
 0x367   : > { %5054 = vmatprep.subr.bf16.mxu1 %v5711_v0 }
 0x369   : > { %5043 = vmatmul.mubr.msk.bf16.vlgmr.msra.gmra.mrb[44].mxu1 %vm1674_vm13, %v5365_v33 }
 0x36a   : > { %5055 = vmatpush3.bf16.msra.mxu1 %v6204_v18  ;;  %5046 = vmatprep.mubr.msk.bf16.mxu1 %vm5712_vm0, %v5711_v0 }
 0x36b   : > { %5056 = vmatprep.subr.bf16.mxu1 %v5711_v0 }
 0x36e   : > { %5057 = vmatpush3.bf16.msra.mxu1 %v6208_v25 }
 0x36f   : > { %5058 = vmatprep.subr.bf16.mxu1 %v5711_v0 }
 0x371   : > { %5047 = vmatmul.mubr.msk.bf16.gmra.mrb[48].mxu1 %vm1674_vm13, %v5366_v34 }
 0x372   : > { %5059 = vmatpush3.bf16.msra.mxu1 %v1685_v32  ;;  %5050 = vmatprep.mubr.msk.bf16.mxu1 %vm5712_vm0, %v5711_v0  ;;  %v5421_v32 = vld [vmem:[%s7028_s6 + $0x104] ss:$8 sps:$4 sm:$0xff]  }
 0x373   : > { %1946 = vmatprep.subr.bf16.mxu1 %v5373_v35  ;;  %v5419_v35 = vld [vmem:[%s7028_s6 + $0x100] ss:$8 sps:$4 sm:$0xff]  }
 0x379   : > { %5051 = vmatmul.mubr.msk.bf16.gmra.mrb[52].mxu1 %vm1674_vm13, %v5367_v36 }
 0x37a   : > { %5060 = vmatprep.mubr.msk.bf16.mxu1 %vm5712_vm0, %v5711_v0 }
 0x381   : > { %5061 = vmatmul.mubr.msk.bf16.vlgmr.msra.gmra.mrb[56].mxu1 %vm1674_vm13, %v5368_v37  ;;  %v5424_v37 = vld [vmem:[%s7028_s6 + $0x114] ss:$8 sps:$4 sm:$0xff]  }
 0x382   : > { %5064 = vmatprep.mubr.msk.bf16.mxu1 %vm5712_vm0, %v5711_v0  ;;  %1947 = vmatpush1.bf16.msra.mxu1 %v5371_v39 }
 0x383   : > { %1948 = vmatprep.subr.bf16.mxu1 %v5376_v40 }
 0x386   : > { %1949 = vmatpush1.bf16.msra.mxu1 %v5374_v42  ;;  %v5422_v42 = vld [vmem:[%s7028_s6 + $0x110] ss:$8 sps:$4 sm:$0xff]  }
 0x387   : > { %1950 = vmatprep.subr.bf16.mxu1 %v5379_v43  ;;  %v5427_v43 = vld [vmem:[%s7028_s6 + $0x124] ss:$8 sps:$4 sm:$0xff]  }
 0x389   : > { %5065 = vmatmul.mubr.msk.bf16.gmra.mrb[60].mxu1 %vm1674_vm13, %v5369_v44 }
 0x38a   : > { %5068 = vmatprep.mubr.msk.bf16.mxu1 %vm5712_vm0, %v5711_v0  ;;  %1951 = vmatpush1.bf16.msra.mxu1 %v5377_v45 }
 0x38b   : > { %1952 = vmatprep.subr.bf16.mxu1 %v5382_v47  ;;  %v5425_v47 = vld [vmem:[%s7028_s6 + $0x120] ss:$8 sps:$4 sm:$0xff]  }
 0x38e   : > { %1953 = vmatpush1.bf16.msra.mxu1 %v5380_v48  ;;  %v5430_v48 = vld [vmem:[%s7028_s6 + $0x134] ss:$8 sps:$4 sm:$0xff]  }
 0x38f   : > { %1954 = vmatprep.subr.bf16.mxu1 %v5385_v49 }
 0x391   : > { %5069 = vmatmul.mubr.msk.bf16.gmra.mrb[64].mxu1 %vm1674_vm13, %v5370_v51  ;;  %v5428_v51 = vld [vmem:[%s7028_s6 + $0x130] ss:$8 sps:$4 sm:$0xff]  }
 0x392   : > { %1955 = vmatpush1.bf16.msra.mxu1 %v5383_v4  ;;  %1978 = vmatprep.mubr.bf16.mxu1 %v5713_v38  ;;  %v5433_v4 = vld [vmem:[%s7028_s6 + $0x144] ss:$8 sps:$4 sm:$0xff]  }
 0x393   : > { %1956 = vmatprep.subr.bf16.mxu1 %v5388_v52  ;;  %v5431_v52 = vld [vmem:[%s7028_s6 + $0x140] ss:$8 sps:$4 sm:$0xff]  }
 0x396   : > { %1957 = vmatpush1.bf16.msra.mxu1 %v5386_v53  ;;  %v5434_v53 = vld [vmem:[%s7028_s6 + $0x150] ss:$8 sps:$4 sm:$0xff]  }
 0x397   : > { %1958 = vmatprep.subr.bf16.mxu1 %v5391_v54  ;;  %v5439_v54 = vld [vmem:[%s7028_s6 + $0x164] ss:$8 sps:$4 sm:$0xff]  }
 0x39a   : > { %1959 = vmatpush1.bf16.msra.mxu1 %v5389_v6  ;;  %v5437_v6 = vld [vmem:[%s7028_s6 + $0x160] ss:$8 sps:$4 sm:$0xff]  }
 0x39b   : > { %1960 = vmatprep.subr.bf16.mxu1 %v5394_v56  ;;  %v5440_v56 = vld [vmem:[%s7028_s6 + $0x170] ss:$8 sps:$4 sm:$0xff]  }
 0x39e   : > { %1961 = vmatpush1.bf16.msra.mxu1 %v5392_v9 }
 0x39f   : > { %2087 = vmatprep.subr.bf16.mxu1 %v5397_v13  ;;  %v5443_v13 = vld [vmem:[%s7030_s8] sm:$0xff]  }
 0x43c   : > { %v1721_v14 = vpop.f32.mrb[44].mxu1 }
 0x43d   : > { %v5044_v41 = vpop.f32.mrb[45].mxu1 }
 0x43e   : > { %v1724_v46 = vpop.f32.mrb[46].mxu1 }
 0x43f   : > { %v1743_v55 = vpack.c.bf16 %v1724_v46, %v1721_v14  ;;  %v5045_v57 = vpop.f32.mrb[47].mxu1  ;;  %v5444_v14 = vld [vmem:[%s7030_s8 + $0xc] sm:$0xff]  }
 0x440   : > { %5088 = vmatprep.mubr.msk.bf16.mxu0 %vm1674_vm13, %v5444_v14  ;;  %v5459_v14 = vld [vmem:[%s7032_s10 + $0xa4] ss:$8 sps:$4 sm:$0xff]  }
 0x441   : > { %1979 = vmatmul.mubr.bf16.vlgmr.msra.gmra.mrb[68].mxu1 %v1743_v55 }
 0x442   : > { %2088 = vmatpush1.bf16.msra.mxu1 %v5395_v50  ;;  %1988 = vmatprep.mubr.bf16.mxu1 %v5713_v38  ;;  %v4565_v50 = vld [vmem:[%s7029_s7] ss:$0 sm:$0xff] }
 0x443   : > { %2089 = vmatprep.subr.bf16.mxu1 %v5400_v58 }
 0x444   : > { %v1729_v61 = vpop.f32.mrb[48].mxu1 }
 0x445   : > { %v5048_v62 = vpop.f32.mrb[49].mxu1 }
 0x446   : > { %2090 = vmatpush1.bf16.msra.mxu1 %v5398_v59  ;;  %v1732_v1 = vpop.f32.mrb[50].mxu1 }
 0x447   : > { %2091 = vmatprep.subr.bf16.mxu1 %v5403_v60  ;;  %v1744_v2 = vpack.c.bf16 %v1732_v1, %v1729_v61  ;;  %v5049_v3 = vpop.f32.mrb[51].mxu1 }
 0x449   : > { %1989 = vmatmul.mubr.bf16.gmra.mrb[72].mxu1 %v1744_v2 }
 0x44a   : > { %2092 = vmatpush1.bf16.msra.mxu1 %v5401_v63  ;;  %1998 = vmatprep.mubr.bf16.mxu1 %v5713_v38 }
 0x44b   : > { %2093 = vmatprep.subr.bf16.mxu1 %v5406_v5 }
 0x44c   : > { %v1737_v10 = vpop.f32.mrb[52].mxu1 }
 0x44d   : > { %v1745_v11 = vpack.c.bf16 %v1737_v10, %v1737_v10  ;;  %v5052_v12 = vpop.f32.mrb[53].mxu1 }
 0x44e   : > { %2094 = vmatpush1.bf16.msra.mxu1 %v5404_v7  ;;  %v1740_v16 = vpop.f32.mrb[54].mxu1 }
 0x44f   : > { %2095 = vmatprep.subr.bf16.mxu1 %v5409_v8  ;;  %v5053_v19 = vpop.f32.mrb[55].mxu1 }
 0x451   : > { %1999 = vmatmul.mubr.bf16.gmra.mrb[76].mxu1 %v1745_v11 }
 0x452   : > { %2096 = vmatpush1.bf16.msra.mxu1 %v5407_v15  ;;  %2119 = vmatprep.mubr.bf16.mxu1 %v5713_v38 }
 0x453   : > { %2097 = vmatprep.subr.bf16.mxu1 %v5412_v17 }
 0x454   : > { %v1808_v22 = vpop.f32.mrb[56].mxu1 }
 0x455   : > { %v5062_v23 = vpop.f32.mrb[57].mxu1 }
 0x456   : > { %2098 = vmatpush1.bf16.msra.mxu1 %v5410_v20  ;;  %v1811_v26 = vpop.f32.mrb[58].mxu1 }
 0x457   : > { %2099 = vmatprep.subr.bf16.mxu1 %v5415_v21  ;;  %v1830_v28 = vpack.c.bf16 %v1811_v26, %v1808_v22  ;;  %v5063_v29 = vpop.f32.mrb[59].mxu1 }
 0x45a   : > { %2100 = vmatpush1.bf16.msra.mxu1 %v5413_v24 }
 0x45b   : > { %2101 = vmatprep.subr.bf16.mxu1 %v5418_v27 }
 0x45c   : > { %v1816_v33 = vpop.f32.mrb[60].mxu1 }
 0x45d   : > { %v5066_v34 = vpop.f32.mrb[61].mxu1 }
 0x45e   : > { %2102 = vmatpush1.bf16.msra.mxu1 %v5416_v31  ;;  %v1819_v36 = vpop.f32.mrb[62].mxu1  ;;  %v5445_v34 = vld [vmem:[%s7030_s8 + $0x8] ss:$0 sps:$4 sm:$0x33]  }
 0x45f   : > { %2245 = vmatprep.subr.bf16.mxu1 %v5421_v32  ;;  %v1831_v39 = vpack.c.bf16 %v1819_v36, %v1816_v33  ;;  %v5067_v40 = vpop.f32.mrb[63].mxu1  ;;  %v5446_v36 = vld [vmem:[%s7030_s8 + $0x14] ss:$0 sps:$4 sm:$0x33]  }
 0x461   : > { %2120 = vmatmul.mubr.bf16.vlgmr.msra.gmra.mrb[68].mxu1 %v6204_v18 }
 0x462   : > { %2246 = vmatpush1.bf16.msra.mxu1 %v5419_v35  ;;  %2129 = vmatprep.mubr.bf16.mxu1 %v5713_v38 }
 0x463   : > { %2247 = vmatprep.subr.bf16.mxu1 %v5424_v37  ;;  %v5447_v37 = vld [vmem:[%s7031_s9] sm:$0xff]  }
 0x464   : > { %v1824_v44 = vpop.f32.mrb[64].mxu1 }
 0x465   : > { %v5070_v45 = vpop.f32.mrb[65].mxu1  ;;  %v1832_v9 = vpack.c.bf16 %v1824_v44, %v1824_v44 }
 0x466   : > { %2248 = vmatpush1.bf16.msra.mxu1 %v5422_v42  ;;  %v1827_v18 = vpop.f32.mrb[66].mxu1 }
 0x467   : > { %2249 = vmatprep.subr.bf16.mxu1 %v5427_v43  ;;  %v5071_v49 = vpop.f32.mrb[67].mxu1 }
 0x469   : > { %2130 = vmatmul.mubr.bf16.gmra.mrb[72].mxu1 %v6208_v25  ;;  %v5436_v25 = vld [vmem:[%s7028_s6 + $0x154] ss:$8 sps:$4 sm:$0xff]  }
 0x46a   : > { %2250 = vmatpush1.bf16.msra.mxu1 %v5425_v47  ;;  %2139 = vmatprep.mubr.bf16.mxu1 %v5713_v38 }
 0x46b   : > { %2251 = vmatprep.subr.bf16.mxu1 %v5430_v48 }
 0x46e   : > { %2252 = vmatpush1.bf16.msra.mxu1 %v5428_v51 }
 0x46f   : > { %2253 = vmatprep.subr.bf16.mxu1 %v5433_v4 }
 0x471   : > { %2140 = vmatmul.mubr.bf16.gmra.mrb[76].mxu1 %v6212_v30  ;;  %v5442_v30 = vld [vmem:[%s7028_s6 + $0x174] ss:$8 sps:$4 sm:$0xff]  }
 0x472   : > { %2254 = vmatpush1.bf16.msra.mxu1 %v5431_v52  ;;  %2277 = vmatprep.mubr.bf16.mxu1 %v5713_v38 }
 0x473   : > { %2255 = vmatprep.subr.bf16.mxu1 %v5436_v25 }
 0x476   : > { %2256 = vmatpush1.bf16.msra.mxu1 %v5434_v53  ;;  %v5448_v53 = vld [vmem:[%s7031_s9 + $0x8] ss:$0 sps:$4 sm:$0x33]  }
 0x477   : > { %2257 = vmatprep.subr.bf16.mxu1 %v5439_v54  ;;  %v5449_v54 = vld [vmem:[%s7031_s9 + $0xc] sm:$0xff]  }
 0x47a   : > { %2258 = vmatpush1.bf16.msra.mxu1 %v5437_v6  ;;  %v5453_v6 = vld [vmem:[%s7032_s10 + $0x84] ss:$8 sps:$4 sm:$0xff]  }
 0x47b   : > { %2259 = vmatprep.subr.bf16.mxu1 %v5442_v30  ;;  %v5450_v30 = vld [vmem:[%s7031_s9 + $0x14] ss:$0 sps:$4 sm:$0x33]  }
 0x47e   : > { %2260 = vmatpush1.bf16.msra.mxu1 %v5440_v56  ;;  %v5451_v56 = vld [vmem:[%s7032_s10 + $0x80] ss:$8 sps:$4 sm:$0xff]  }
 0x481   : > { %2278 = vmatmul.mubr.bf16.vlgmr.msra.gmra.mrb[68].mxu1 %v1830_v28 }
 0x482   : > { %2287 = vmatprep.mubr.bf16.mxu1 %v5713_v38 }
 0x489   : > { %2288 = vmatmul.mubr.bf16.gmra.mrb[72].mxu1 %v1831_v39 }
 0x48a   : > { %2297 = vmatprep.mubr.bf16.mxu1 %v5713_v38 }
 0x491   : > { %2298 = vmatmul.mubr.bf16.gmra.mrb[76].mxu1 %v1832_v9  ;;  %v5456_v9 = vld [vmem:[%s7032_s10 + $0x94] ss:$8 sps:$4 sm:$0xff]  }
 0x492   : > { %5078 = vmatprep.mubr.msk.bf16.mxu1 %vm1674_vm13, %v5443_v13  ;;  %v5454_v13 = vld [vmem:[%s7032_s10 + $0x90] ss:$8 sps:$4 sm:$0xff]  }
 0x554   : > { %v2279_v41 = vpop.f32.mrb[68].mxu1 }
 0x555   : > { %v2281_v46 = vpop.f32.mrb[69].mxu1 }
 0x556   : > { %v2316_v55 = vmax.f32 %v2279_v41, %v2281_v46  ;;  %v2283_v57 = vpop.f32.mrb[70].mxu1  ;;  %v5457_v41 = vld [vmem:[%s7032_s10 + $0xa0] ss:$8 sps:$4 sm:$0xff]   ;;  %v5462_v46 = vld [vmem:[%s7032_s10 + $0xb4] ss:$8 sps:$4 sm:$0xff]  }
 0x557   : > { %v2285_v58 = vpop.f32.mrb[71].mxu1 }
 0x558   : > { %v2328_v59 = vadd.f32 %v4565_v50, %v2316_v55  ;;  %v2317_v60 = vmax.f32 %v2283_v57, %v2285_v58  ;;  %v5465_v55 = vld [vmem:[%s7032_s10 + $0xc4] ss:$8 sps:$4 sm:$0xff]   ;;  %v5463_v57 = vld [vmem:[%s7032_s10 + $0xc0] ss:$8 sps:$4 sm:$0xff]   ;;  %v5468_v58 = vld [vmem:[%s7032_s10 + $0xd4] ss:$8 sps:$4 sm:$0xff]  }
 0x55a   : > { %v2338_v61 = vmul.f32 0.01, %v2328_v59  ;;  %v2329_v62 = vadd.f32 %v4565_v50, %v2317_v60  ;;  %vm2333_vm14 = vcmp.ge.f32.partialorder %v2328_v59, 0.0  ;;  %v5471_v60 = vld [vmem:[%s7032_s10 + $0xe4] ss:$8 sps:$4 sm:$0xff]  }
 0x55c   : > { %vm2334_vm15 = vcmp.ge.f32.partialorder %v2329_v62, 0.0  ;;  %v2339_v63 = vmul.f32 0.01, %v2329_v62  ;;  %v2289_v1 = vpop.f32.mrb[72].mxu1  ;;  %v2343_v3 = vsel %vm2333_vm14, %v2328_v59, %v2338_v61  ;;  %v5466_v59 = vld [vmem:[%s7032_s10 + $0xd0] ss:$8 sps:$4 sm:$0xff]  }
 0x55d   : > { %v2291_v2 = vpop.f32.mrb[73].mxu1  ;;  %v5469_v61 = vld [vmem:[%s7032_s10 + $0xe0] ss:$8 sps:$4 sm:$0xff]  }
 0x55e   : > { %v2344_v5 = vsel %vm2334_vm15, %v2329_v62, %v2339_v63  ;;  %v2318_v7 = vmax.f32 %v2289_v1, %v2291_v2  ;;  %v2293_v8 = vpop.f32.mrb[74].mxu1  ;;  %v5474_v62 = vld [vmem:[%s7032_s10 + $0xf4] ss:$8 sps:$4 sm:$0xff]   ;;  %v5472_v63 = vld [vmem:[%s7032_s10 + $0xf0] ss:$8 sps:$4 sm:$0xff]  }
 0x55f   : > { %v2295_v10 = vpop.f32.mrb[75].mxu1  ;;  %v2348_v11 = vpack.c.bf16 %v2344_v5, %v2343_v3  ;;  %v5477_v1 = vld [vmem:[%s7032_s10 + $0x4] ss:$8 sps:$4 sm:$0xff]  }
 0x560   : > { %v2330_v12 = vadd.f32 %v4565_v50, %v2318_v7  ;;  %v2319_v15 = vmax.f32 %v2293_v8, %v2295_v10  ;;  %v5475_v8 = vld [vmem:[%s7032_s10] ss:$8 sps:$4 sm:$0xff]  }
 0x561   : > { %5072 = vmatprep.subr.bf16.mxu1 %v2348_v11  ;;  %5082 = vmatprep.subr.bf16.mxu0 %v2348_v11 }
 0x562   : > { %v2340_v16 = vmul.f32 0.01, %v2330_v12  ;;  %v2331_v17 = vadd.f32 %v4565_v50, %v2319_v15  ;;  %5073 = vmatpush3.bf16.msra.mxu1 %v2348_v11  ;;  %5083 = vmatpush3.bf16.msra.mxu0 %v2348_v11  ;;  %vm2335_vm2 = vcmp.ge.f32.partialorder %v2330_v12, 0.0  ;;  %v5480_v11 = vld [vmem:[%s7032_s10 + $0x14] ss:$8 sps:$4 sm:$0xff]  }
 0x563   : > { %v5483_v15 = vld [vmem:[%s7032_s10 + $0x24] ss:$8 sps:$4 sm:$0xff]  }
 0x564   : > { %vm2336_vm3 = vcmp.ge.f32.partialorder %v2331_v17, 0.0  ;;  %v2341_v19 = vmul.f32 0.01, %v2331_v17  ;;  %v2299_v20 = vpop.f32.mrb[76].mxu1  ;;  %v2345_v22 = vsel %vm2335_vm2, %v2330_v12, %v2340_v16  ;;  %v5478_v12 = vld [vmem:[%s7032_s10 + $0x10] ss:$8 sps:$4 sm:$0xff]  }
 0x565   : > { %v2301_v21 = vpop.f32.mrb[77].mxu1 }
 0x566   : > { %v2346_v23 = vsel %vm2336_vm3, %v2331_v17, %v2341_v19  ;;  %v2320_v24 = vmax.f32 %v2299_v20, %v2301_v21  ;;  %v2303_v26 = vpop.f32.mrb[78].mxu1  ;;  %v5481_v20 = vld [vmem:[%s7032_s10 + $0x20] ss:$8 sps:$4 sm:$0xff]  }
 0x567   : > { %v2304_v27 = vpop.f32.mrb[79].mxu1  ;;  %v2349_v28 = vpack.c.bf16 %v2346_v23, %v2345_v22  ;;  %v5486_v23 = vld [vmem:[%s7032_s10 + $0x34] ss:$8 sps:$4 sm:$0xff]   ;;  %v5484_v26 = vld [vmem:[%s7032_s10 + $0x30] ss:$8 sps:$4 sm:$0xff]  }
 0x568   : > { %v2332_v29 = vadd.f32 %v4565_v50, %v2320_v24  ;;  %v5460_v50 = vld [vmem:[%s7032_s10 + $0xb0] ss:$8 sps:$4 sm:$0xff]   ;;  %v5489_v27 = vld [vmem:[%s7032_s10 + $0x44] ss:$8 sps:$4 sm:$0xff]  }
 0x569   : > { %5074 = vmatprep.subr.bf16.mxu1 %v2349_v28  ;;  %5084 = vmatprep.subr.bf16.mxu0 %v2349_v28 }
 0x56a   : > { %vm2337_vm4 = vcmp.ge.f32.partialorder %v2332_v29, 0.0  ;;  %v2342_v31 = vmul.f32 0.01, %v2332_v29  ;;  %5075 = vmatpush3.bf16.msra.mxu1 %v2349_v28  ;;  %5085 = vmatpush3.bf16.msra.mxu0 %v2349_v28  ;;  %v5487_v28 = vld [vmem:[%s7032_s10 + $0x40] ss:$8 sps:$4 sm:$0xff]  }
 0x56c   : > { %v2347_v32 = vsel %vm2337_vm4, %v2332_v29, %v2342_v31  ;;  %v5492_v29 = vld [vmem:[%s7032_s10 + $0x54] ss:$8 sps:$4 sm:$0xff]   ;;  %v5490_v31 = vld [vmem:[%s7032_s10 + $0x50] ss:$8 sps:$4 sm:$0xff]  }
 0x56d   : > { %v2350_v33 = vpack.c.bf16 %v2347_v32, %v2347_v32  ;;  %v5495_v32 = vld [vmem:[%s7032_s10 + $0x64] ss:$8 sps:$4 sm:$0xff]  }
 0x56f   : > { %5248 = vmatprep.subr.msk.bf16.mxu1 %vm691_vm1, %v2350_v33  ;;  %5249 = vmatprep.subr.msk.bf16.mxu0 %vm691_vm1, %v2350_v33  ;;  %v2369_v35 = vsel %vm691_vm1, %v2350_v33, 0  ;;  %v5493_v33 = vld [vmem:[%s7032_s10 + $0x60] ss:$8 sps:$4 sm:$0xff]  }
 0x570   : > { %5077 = vmatpush3.bf16.msra.mxu1 %v2369_v35  ;;  %5087 = vmatpush3.bf16.msra.mxu0 %v2369_v35  ;;  %v5496_v35 = vld [vmem:[%s7032_s10 + $0x70] ss:$8 sps:$4 sm:$0xff]  }
 0x571   : > { %5108 = vmatprep.subr.bf16.mxu1 %v5711_v0 }
 0x573   : > { %5079 = vmatmul.mubr.msk.bf16.vlgmr.msra.gmra.mrb[80].mxu1 %vm1674_vm13, %v5445_v34  ;;  %5089 = vmatmul.mubr.msk.bf16.vlgmr.msra.gmra.mrb[40].mxu0 %vm1674_vm13, %v5446_v36  ;;  %v5498_v34 = vld [vmem:[%s7032_s10 + $0x74] ss:$8 sps:$4 sm:$0xff]   ;;  %v5501_v36 = vld [vmem:[%s7032_s10 + $0x104] ss:$8 sps:$4 sm:$0xff]  }
 0x574   : > { %5112 = vmatprep.mubr.msk.bf16.mxu1 %vm5712_vm0, %v5711_v0  ;;  %5096 = vmatprep.mubr.msk.bf16.mxu0 %vm2501_vm5, %v5447_v37  ;;  %v5499_v37 = vld [vmem:[%s7032_s10 + $0x100] ss:$8 sps:$4 sm:$0xff]  }
 0x646   : > { %v5080_v39 = vpop.f32.mrb[80].mxu1  ;;  %v5090_v40 = vpop.f32.mrb[40].mxu0 }
 0x647   : > { %v2487_v42 = vmax.f32 %v5080_v39, %v5090_v40  ;;  %v2405_v43 = vpop.f32.mrb[81].mxu1  ;;  %v2471_v44 = vpop.f32.mrb[41].mxu0  ;;  %v5504_v39 = vld [vmem:[%s7032_s10 + $0x114] ss:$8 sps:$4 sm:$0xff]   ;;  %v5502_v40 = vld [vmem:[%s7032_s10 + $0x110] ss:$8 sps:$4 sm:$0xff]  }
 0x648   : > { %v2485_v45 = vmax.f32 %v2405_v43, %v2471_v44  ;;  %v5081_v47 = vpop.f32.mrb[82].mxu1  ;;  %v5091_v18 = vpop.f32.mrb[42].mxu0  ;;  %v5505_v43 = vld [vmem:[%s7032_s10 + $0x120] ss:$8 sps:$4 sm:$0xff]   ;;  %v5510_v44 = vld [vmem:[%s7032_s10 + $0x134] ss:$8 sps:$4 sm:$0xff]  }
 0x649   : > { %v2408_v48 = vpop.f32.mrb[83].mxu1  ;;  %v2474_v49 = vpop.f32.mrb[43].mxu0  ;;  %v6442_v52 = vpack.c.bf16 %v2487_v42, %v2487_v42  ;;  %v5507_v42 = vld [vmem:[%s7032_s10 + $0x124] ss:$8 sps:$4 sm:$0xff]   ;;  %v5511_v18 = vld [vmem:[%s7032_s10 + $0x140] ss:$8 sps:$4 sm:$0xff]  }
 0x64a   : > { %v2486_v51 = vmax.f32 %v2408_v48, %v2474_v49  ;;  %v5513_v47 = vld [vmem:[%s7032_s10 + $0x144] ss:$8 sps:$4 sm:$0xff]   ;;  %v5516_v48 = vld [vmem:[%s7032_s10 + $0x154] ss:$8 sps:$4 sm:$0xff]   ;;  %v5514_v49 = vld [vmem:[%s7032_s10 + $0x150] ss:$8 sps:$4 sm:$0xff]  }
 0x64b   : > { %v2509_v25 = vsel %vm691_vm1, %v6442_v52, 0 }
 0x64c   : > { %v6440_v4 = vpack.c.bf16 %v2486_v51, %v2485_v45  ;;  %v5508_v45 = vld [vmem:[%s7032_s10 + $0x130] ss:$8 sps:$4 sm:$0xff]   ;;  %v5519_v51 = vld [vmem:[%s7032_s10 + $0x164] ss:$8 sps:$4 sm:$0xff]  }
 0x64e   : > { %5092 = vmatprep.subr.bf16.mxu0 %v6440_v4 }
 0x64f   : > { %5093 = vmatpush3.bf16.msra.mxu0 %v6440_v4 }
 0x650   : > { %5250 = vmatprep.subr.msk.bf16.mxu0 %vm691_vm1, %v6442_v52 }
 0x653   : > { %5095 = vmatpush3.bf16.msra.mxu0 %v2509_v25 }
 0x654   : > { %5100 = vmatprep.subr.bf16.mxu0 %v6440_v4 }
 0x656   : > { %5097 = vmatmul.mubr.msk.bf16.vlgmr.msra.gmra.mrb[44].mxu0 %vm2501_vm5, %v5448_v53 }
 0x657   : > { %5101 = vmatpush3.bf16.msra.mxu0 %v6440_v4  ;;  %5104 = vmatprep.mubr.msk.bf16.mxu0 %vm2501_vm5, %v5449_v54 }
 0x658   : > { %5251 = vmatprep.subr.msk.bf16.mxu0 %vm691_vm1, %v6442_v52 }
 0x65b   : > { %5103 = vmatpush3.bf16.msra.mxu0 %v2509_v25  ;;  %v5520_v25 = vld [vmem:[%s7032_s10 + $0x170] ss:$8 sps:$4 sm:$0xff]  }
 0x65c   : > { %2742 = vmatprep.subr.bf16.mxu0 %v5453_v6 }
 0x65e   : > { %5105 = vmatmul.mubr.msk.bf16.vlgmr.msra.gmra.mrb[48].mxu0 %vm2501_vm5, %v5450_v30  ;;  %v4668_v30 = vld [vmem:[%s7033_s11] ss:$0 sm:$0xff] }
 0x65f   : > { %2743 = vmatpush1.bf16.msra.mxu0 %v5451_v56  ;;  %2774 = vmatprep.mubr.bf16.mxu0 %v5713_v38 }
 0x660   : > { %2744 = vmatprep.subr.bf16.mxu0 %v5456_v9 }
 0x663   : > { %2745 = vmatpush1.bf16.msra.mxu0 %v5454_v13 }
 0x664   : > { %2746 = vmatprep.subr.bf16.mxu0 %v5459_v14 }
 0x667   : > { %2747 = vmatpush1.bf16.msra.mxu0 %v5457_v41 }
 0x668   : > { %2748 = vmatprep.subr.bf16.mxu0 %v5462_v46 }
 0x66b   : > { %2749 = vmatpush1.bf16.msra.mxu0 %v5460_v50 }
 0x66c   : > { %2750 = vmatprep.subr.bf16.mxu0 %v5465_v55 }
 0x66f   : > { %2751 = vmatpush1.bf16.msra.mxu0 %v5463_v57 }
 0x670   : > { %2752 = vmatprep.subr.bf16.mxu0 %v5468_v58 }
 0x673   : > { %2753 = vmatpush1.bf16.msra.mxu0 %v5466_v59 }
 0x674   : > { %2754 = vmatprep.subr.bf16.mxu0 %v5471_v60 }
 0x677   : > { %2755 = vmatpush1.bf16.msra.mxu0 %v5469_v61 }
 0x678   : > { %2756 = vmatprep.subr.bf16.mxu0 %v5474_v62 }
 0x67b   : > { %2757 = vmatpush1.bf16.msra.mxu0 %v5472_v63 }
 0x67c   : > { %2873 = vmatprep.subr.bf16.mxu0 %v5477_v1 }
 0x729   : > { %v5098_v2 = vpop.f32.mrb[44].mxu0 }
 0x72a   : > { %v2545_v3 = vpop.f32.mrb[45].mxu0  ;;  %v2560_v22 = vpack.c.bf16 %v5098_v2, %v5098_v2 }
 0x72b   : > { %v5099_v5 = vpop.f32.mrb[46].mxu0 }
 0x72c   : > { %v2548_v7 = vpop.f32.mrb[47].mxu0 }
 0x72d   : > { %v2559_v10 = vpack.c.bf16 %v2548_v7, %v2545_v3 }
 0x72f   : > { %2775 = vmatmul.mubr.bf16.vlgmr.msra.gmra.mrb[52].mxu0 %v2559_v10  ;;  %v3102_v10 = vld [vmem:[%s7034_s12] sm:$0xf] }
 0x730   : > { %2874 = vmatpush1.bf16.msra.mxu0 %v5475_v8  ;;  %2784 = vmatprep.mubr.bf16.mxu0 %v5713_v38 }
 0x731   : > { %2875 = vmatprep.subr.bf16.mxu0 %v5480_v11  ;;  %v6531_v16 = vpop.f32.mrb[48].mxu0  ;;  %v4670_v11 = vld [vmem:[%s7034_s12 + $0x4] sm:$0xf] }
 0x732   : > { %v6533_v17 = vpop.f32.mrb[49].mxu0  ;;  %v2628_v53 = vpack.c.bf16 %v6531_v16, %v6531_v16  ;;  %v5528_v16 = vld [vmem:[%s7035_s13 + $0x14] ss:$8 sps:$4 sm:$0xff]  }
 0x733   : > { %v5107_v19 = vpop.f32.mrb[50].mxu0 }
 0x734   : > { %2876 = vmatpush1.bf16.msra.mxu0 %v5478_v12  ;;  %v6538_v21 = vpop.f32.mrb[51].mxu0  ;;  %v5523_v12 = vld [vmem:[%s7035_s13] ss:$8 sps:$4 sm:$0xff]   ;;  %v5534_v19 = vld [vmem:[%s7035_s13 + $0x24] ss:$8 sps:$4 sm:$0xff]  }
 0x735   : > { %2877 = vmatprep.subr.bf16.mxu0 %v5483_v15  ;;  %v2627_v24 = vpack.c.bf16 %v6538_v21, %v6533_v17  ;;  %v5525_v15 = vld [vmem:[%s7035_s13 + $0x4] ss:$8 sps:$4 sm:$0xff]   ;;  %v5526_v17 = vld [vmem:[%s7035_s13 + $0x10] ss:$8 sps:$4 sm:$0xff]   ;;  %v5540_v21 = vld [vmem:[%s7035_s13 + $0x34] ss:$8 sps:$4 sm:$0xff]  }
 0x737   : > { %2785 = vmatmul.mubr.bf16.gmra.mrb[56].mxu0 %v2560_v22  ;;  %v5538_v22 = vld [vmem:[%s7035_s13 + $0x30] ss:$8 sps:$4 sm:$0xff]  }
 0x738   : > { %2878 = vmatpush1.bf16.msra.mxu0 %v5481_v20  ;;  %2905 = vmatprep.mubr.bf16.mxu0 %v5713_v38  ;;  %v5532_v20 = vld [vmem:[%s7035_s13 + $0x20] ss:$8 sps:$4 sm:$0xff]  }
 0x739   : > { %2879 = vmatprep.subr.bf16.mxu0 %v5486_v23  ;;  %v5546_v23 = vld [vmem:[%s7035_s13 + $0x44] ss:$8 sps:$4 sm:$0xff]  }
 0x73c   : > { %2880 = vmatpush1.bf16.msra.mxu0 %v5484_v26  ;;  %v5552_v26 = vld [vmem:[%s7035_s13 + $0x54] ss:$8 sps:$4 sm:$0xff]  }
 0x73d   : > { %2881 = vmatprep.subr.bf16.mxu0 %v5489_v27  ;;  %v5550_v27 = vld [vmem:[%s7035_s13 + $0x50] ss:$8 sps:$4 sm:$0xff]  }
 0x740   : > { %2882 = vmatpush1.bf16.msra.mxu0 %v5487_v28  ;;  %v5558_v28 = vld [vmem:[%s7035_s13 + $0x64] ss:$8 sps:$4 sm:$0xff]  }
 0x741   : > { %2883 = vmatprep.subr.bf16.mxu0 %v5492_v29  ;;  %v5556_v29 = vld [vmem:[%s7035_s13 + $0x60] ss:$8 sps:$4 sm:$0xff]  }
 0x744   : > { %2884 = vmatpush1.bf16.msra.mxu0 %v5490_v31  ;;  %v5564_v31 = vld [vmem:[%s7035_s13 + $0x74] ss:$8 sps:$4 sm:$0xff]  }
 0x745   : > { %2885 = vmatprep.subr.bf16.mxu0 %v5495_v32  ;;  %v5562_v32 = vld [vmem:[%s7035_s13 + $0x70] ss:$8 sps:$4 sm:$0xff]  }
 0x748   : > { %2886 = vmatpush1.bf16.msra.mxu0 %v5493_v33 }
 0x749   : > { %2887 = vmatprep.subr.bf16.mxu0 %v5498_v34 }
 0x74c   : > { %2888 = vmatpush1.bf16.msra.mxu0 %v5496_v35 }
 0x74d   : > { %3021 = vmatprep.subr.bf16.mxu0 %v5501_v36 }
 0x74f   : > { %2906 = vmatmul.mubr.bf16.vlgmr.msra.gmra.mrb[52].mxu0 %v6440_v4  ;;  %v5517_v4 = vld [vmem:[%s7032_s10 + $0x160] ss:$8 sps:$4 sm:$0xff]  }
 0x750   : > { %3022 = vmatpush1.bf16.msra.mxu0 %v5499_v37  ;;  %2915 = vmatprep.mubr.bf16.mxu0 %v5713_v38 }
 0x751   : > { %3023 = vmatprep.subr.bf16.mxu0 %v5504_v39 }
 0x754   : > { %3024 = vmatpush1.bf16.msra.mxu0 %v5502_v40 }
 0x755   : > { %3025 = vmatprep.subr.bf16.mxu0 %v5507_v42 }
 0x757   : > { %2916 = vmatmul.mubr.bf16.gmra.mrb[56].mxu0 %v6442_v52  ;;  %v5522_v52 = vld [vmem:[%s7032_s10 + $0x174] ss:$8 sps:$4 sm:$0xff]  }
 0x758   : > { %3026 = vmatpush1.bf16.msra.mxu0 %v5505_v43  ;;  %3053 = vmatprep.mubr.bf16.mxu0 %v5713_v38 }
 0x759   : > { %3027 = vmatprep.subr.bf16.mxu0 %v5510_v44 }
 0x75c   : > { %3028 = vmatpush1.bf16.msra.mxu0 %v5508_v45 }
 0x75d   : > { %3029 = vmatprep.subr.bf16.mxu0 %v5513_v47  ;;  %v3196_v47 = vld [vmem:[%s7036_s14] sm:$0x1] }
 0x760   : > { %3030 = vmatpush1.bf16.msra.mxu0 %v5511_v18  ;;  %v5531_v18 = vld [vmem:[%s7035_s13 + $0x84] ss:$8 sps:$4 sm:$0xff]  }
 0x761   : > { %3031 = vmatprep.subr.bf16.mxu0 %v5516_v48  ;;  %v4673_v48 = vld [vmem:[%s7036_s14 + $0x1] sm:$0x1] }
 0x764   : > { %3032 = vmatpush1.bf16.msra.mxu0 %v5514_v49  ;;  %v5529_v49 = vld [vmem:[%s7035_s13 + $0x80] ss:$8 sps:$4 sm:$0xff]  }
 0x765   : > { %3033 = vmatprep.subr.bf16.mxu0 %v5519_v51  ;;  %v5537_v51 = vld [vmem:[%s7035_s13 + $0x94] ss:$8 sps:$4 sm:$0xff]  }
 0x768   : > { %3034 = vmatpush1.bf16.msra.mxu0 %v5517_v4  ;;  %v5535_v4 = vld [vmem:[%s7035_s13 + $0x90] ss:$8 sps:$4 sm:$0xff]  }
 0x769   : > { %3035 = vmatprep.subr.bf16.mxu0 %v5522_v52  ;;  %v5543_v52 = vld [vmem:[%s7035_s13 + $0xa4] ss:$8 sps:$4 sm:$0xff]  }
 0x76c   : > { %3036 = vmatpush1.bf16.msra.mxu0 %v5520_v25  ;;  %v5541_v25 = vld [vmem:[%s7035_s13 + $0xa0] ss:$8 sps:$4 sm:$0xff]  }
 0x76d   : > { %3526 = vmatprep.subr.bf16.mxu0 %v5525_v15  ;;  %v5571_v15 = vld [vmem:[%s7035_s13 + $0x100] ss:$8 sps:$4 sm:$0xff]  }
 0x76f   : > { %3054 = vmatmul.mubr.bf16.vlgmr.msra.gmra.mrb[52].mxu0 %v2627_v24  ;;  %v5544_v24 = vld [vmem:[%s7035_s13 + $0x40] ss:$8 sps:$4 sm:$0xff]  }
 0x770   : > { %3063 = vmatprep.mubr.bf16.mxu0 %v5713_v38  ;;  %3527 = vmatpush1.bf16.msra.mxu0 %v5523_v12  ;;  %v4723_v12 = vld [vmem:[%s7036_s14 + $0x2] sm:$0x1] }
 0x771   : > { %3528 = vmatprep.subr.bf16.mxu0 %v5528_v16  ;;  %v5579_v16 = vld [vmem:[%s7035_s13 + $0x114] ss:$8 sps:$4 sm:$0xff]  }
 0x774   : > { %3529 = vmatpush1.bf16.msra.mxu0 %v5526_v17  ;;  %v5586_v17 = vld [vmem:[%s7035_s13 + $0x1a0] ss:$8 sps:$4 sm:$0xff]  }
 0x775   : > { %3530 = vmatprep.subr.bf16.mxu0 %v5534_v19  ;;  %v5594_v19 = vld [vmem:[%s7035_s13 + $0x1b4] ss:$8 sps:$4 sm:$0xff]  }
 0x777   : > { %3064 = vmatmul.mubr.bf16.gmra.mrb[56].mxu0 %v2628_v53  ;;  %v5549_v53 = vld [vmem:[%s7035_s13 + $0xb4] ss:$8 sps:$4 sm:$0xff]  }
 0x778   : > { %3558 = vmatprep.mubr.bf16.mxu0 %v5713_v38  ;;  %3531 = vmatpush1.bf16.msra.mxu0 %v5532_v20  ;;  %v5577_v20 = vld [vmem:[%s7035_s13 + $0x110] ss:$8 sps:$4 sm:$0xff]  }
 0x779   : > { %3532 = vmatprep.subr.bf16.mxu0 %v5540_v21  ;;  %v5585_v21 = vld [vmem:[%s7035_s13 + $0x124] ss:$8 sps:$4 sm:$0xff]  }
 0x77c   : > { %3533 = vmatpush1.bf16.msra.mxu0 %v5538_v22  ;;  %v5592_v22 = vld [vmem:[%s7035_s13 + $0x1b0] ss:$8 sps:$4 sm:$0xff]  }
 0x77d   : > { %3534 = vmatprep.subr.bf16.mxu0 %v5546_v23  ;;  %v5600_v23 = vld [vmem:[%s7035_s13 + $0x1c4] ss:$8 sps:$4 sm:$0xff]  }
 0x780   : > { %3535 = vmatpush1.bf16.msra.mxu0 %v5544_v24  ;;  %v5591_v24 = vld [vmem:[%s7035_s13 + $0x134] ss:$8 sps:$4 sm:$0xff]  }
 0x781   : > { %3536 = vmatprep.subr.bf16.mxu0 %v5552_v26  ;;  %v5598_v26 = vld [vmem:[%s7035_s13 + $0x1c0] ss:$8 sps:$4 sm:$0xff]  }
 0x784   : > { %3537 = vmatpush1.bf16.msra.mxu0 %v5550_v27  ;;  %v5606_v27 = vld [vmem:[%s7035_s13 + $0x1d4] ss:$8 sps:$4 sm:$0xff]  }
 0x785   : > { %3538 = vmatprep.subr.bf16.mxu0 %v5558_v28  ;;  %v5589_v28 = vld [vmem:[%s7035_s13 + $0x130] ss:$8 sps:$4 sm:$0xff]  }
 0x788   : > { %3539 = vmatpush1.bf16.msra.mxu0 %v5556_v29  ;;  %v5597_v29 = vld [vmem:[%s7035_s13 + $0x144] ss:$8 sps:$4 sm:$0xff]  }
 0x789   : > { %3540 = vmatprep.subr.bf16.mxu0 %v5564_v31  ;;  %v5604_v31 = vld [vmem:[%s7035_s13 + $0x1d0] ss:$8 sps:$4 sm:$0xff]  }
 0x78c   : > { %3541 = vmatpush1.bf16.msra.mxu0 %v5562_v32  ;;  %v5595_v32 = vld [vmem:[%s7035_s13 + $0x140] ss:$8 sps:$4 sm:$0xff]  }
 0x78d   : > { %5142 = vmatprep.subr.bf16.mxu0 %v5711_v0 }
 0x842   : > { %v3055_v54 = vpop.f32.mrb[52].mxu0 }
 0x843   : > { %v3057_v6 = vpop.f32.mrb[53].mxu0 }
 0x844   : > { %v3078_v56 = vmax.f32 %v3055_v54, %v3057_v6  ;;  %v3059_v9 = vpop.f32.mrb[54].mxu0  ;;  %v5547_v54 = vld [vmem:[%s7035_s13 + $0xb0] ss:$8 sps:$4 sm:$0xff]   ;;  %v5555_v6 = vld [vmem:[%s7035_s13 + $0xc4] ss:$8 sps:$4 sm:$0xff]  }
 0x845   : > { %v3061_v13 = vpop.f32.mrb[55].mxu0 }
 0x846   : > { %v3088_v14 = vadd.f32 %v4668_v30, %v3078_v56  ;;  %v3079_v41 = vmax.f32 %v3059_v9, %v3061_v13  ;;  %v5561_v56 = vld [vmem:[%s7035_s13 + $0xd4] ss:$8 sps:$4 sm:$0xff]   ;;  %v5559_v9 = vld [vmem:[%s7035_s13 + $0xd0] ss:$8 sps:$4 sm:$0xff]   ;;  %v5567_v13 = vld [vmem:[%s7035_s13 + $0xe4] ss:$8 sps:$4 sm:$0xff]  }
 0x848   : > { %v3094_v46 = vmul.f32 0.01, %v3088_v14  ;;  %v3089_v50 = vadd.f32 %v4668_v30, %v3079_v41  ;;  %vm3091_vm6 = vcmp.ge.f32.partialorder %v3088_v14, 0.0  ;;  %v5568_v41 = vld [vmem:[%s7035_s13 + $0xf0] ss:$8 sps:$4 sm:$0xff]  }
 0x84a   : > { %vm3092_vm7 = vcmp.ge.f32.partialorder %v3089_v50, 0.0  ;;  %v3095_v55 = vmul.f32 0.01, %v3089_v50  ;;  %v3065_v57 = vpop.f32.mrb[56].mxu0  ;;  %v3097_v59 = vsel %vm3091_vm6, %v3088_v14, %v3094_v46  ;;  %v5565_v14 = vld [vmem:[%s7035_s13 + $0xe0] ss:$8 sps:$4 sm:$0xff]  }
 0x84b   : > { %v3067_v58 = vpop.f32.mrb[57].mxu0  ;;  %v5570_v46 = vld [vmem:[%s7035_s13 + $0xf4] ss:$8 sps:$4 sm:$0xff]  }
 0x84c   : > { %v3098_v60 = vsel %vm3092_vm7, %v3089_v50, %v3095_v55  ;;  %v3080_v61 = vmax.f32 %v3065_v57, %v3067_v58  ;;  %v3069_v62 = vpop.f32.mrb[58].mxu0  ;;  %v5576_v58 = vld [vmem:[%s7035_s13 + $0x184] ss:$8 sps:$4 sm:$0xff]  }
 0x84d   : > { %v3070_v63 = vpop.f32.mrb[59].mxu0  ;;  %v3100_v1 = vpack.c.bf16 %v3098_v60, %v3097_v59  ;;  %v4757_v62 = vld [vmem:[%s7036_s14 + $0x3] sm:$0x1] }
 0x84e   : > { %v3090_v2 = vadd.f32 %v4668_v30, %v3080_v61  ;;  %v5553_v30 = vld [vmem:[%s7035_s13 + $0xc0] ss:$8 sps:$4 sm:$0xff]  }
 0x84f   : > { %5109 = vmatpush3.bf16.msra.mxu1 %v3100_v1 }
 0x850   : > { %vm3093_vm8 = vcmp.ge.f32.partialorder %v3090_v2, 0.0  ;;  %v3096_v3 = vmul.f32 0.01, %v3090_v2  ;;  %5110 = vmatprep.subr.bf16.mxu1 %v5711_v0 }
 0x852   : > { %v3099_v5 = vsel %vm3093_vm8, %v3090_v2, %v3096_v3  ;;  %v5573_v2 = vld [vmem:[%s7035_s13 + $0x104] ss:$8 sps:$4 sm:$0xff]   ;;  %v5574_v3 = vld [vmem:[%s7035_s13 + $0x180] ss:$8 sps:$4 sm:$0xff]  }
 0x853   : > { %v3101_v7 = vpack.c.bf16 %v3099_v5, %v3099_v5 }
 0x855   : > { %v3107_v8 = vsel %vm691_vm1, %v3101_v7, 0  ;;  %vm3201_vm1 = vcmask 1043456   ;;  %v5582_v7 = vld [vmem:[%s7035_s13 + $0x194] ss:$8 sps:$4 sm:$0xff]  }
 0x856   : > { %5111 = vmatpush3.bf16.msra.mxu1 %v3107_v8 }
 0x857   : > { %5116 = vmatprep.subr.bf16.mxu1 %v5711_v0 }
 0x859   : > { %5113 = vmatmul.mubr.msk.bf16.vlgmr.msra.gmra.mrb[84].mxu1 %vm2501_vm5, %v3102_v10  ;;  %v5580_v10 = vld [vmem:[%s7035_s13 + $0x190] ss:$8 sps:$4 sm:$0xff]  }
 0x85a   : > { %5117 = vmatpush3.bf16.msra.mxu1 %v3100_v1  ;;  %5120 = vmatprep.mubr.msk.bf16.mxu1 %vm5712_vm0, %v5711_v0 }
 0x85b   : > { %5118 = vmatprep.subr.bf16.mxu1 %v5711_v0 }
 0x85e   : > { %5119 = vmatpush3.bf16.msra.mxu1 %v3107_v8 }
 0x85f   : > { %5124 = vmatprep.subr.bf16.mxu1 %v5711_v0 }
 0x861   : > { %5121 = vmatmul.mubr.msk.bf16.vlgmr.msra.gmra.mrb[88].mxu1 %vm2501_vm5, %v4670_v11  ;;  %v5588_v11 = vld [vmem:[%s7035_s13 + $0x1a4] ss:$8 sps:$4 sm:$0xff]  }
 0x862   : > { %5126 = vmatprep.mubr.msk.bf16.mxu1 %vm5712_vm0, %v5711_v0 }
 0x92c   : > { %v3143_v33 = vpop.f32.mrb[84].mxu1 }
 0x92d   : > { %v5114_v34 = vpop.f32.mrb[85].mxu1 }
 0x92e   : > { %v3146_v35 = vpop.f32.mrb[86].mxu1  ;;  %v5601_v34 = vld [vmem:[%s7035_s13 + $0x150] ss:$8 sps:$4 sm:$0xff]  }
 0x92f   : > { %v5115_v36 = vpop.f32.mrb[87].mxu1  ;;  %v5609_v35 = vld [vmem:[%s7035_s13 + $0x164] ss:$8 sps:$4 sm:$0xff]  }
 0x930   : > { %v5607_v36 = vld [vmem:[%s7035_s13 + $0x160] ss:$8 sps:$4 sm:$0xff]  }
 0x934   : > { %v3188_v37 = vpop.f32.mrb[88].mxu1 }
 0x935   : > { %v3194_v39 = vmax.f32 %v3143_v33, %v3188_v37  ;;  %v5122_v40 = vpop.f32.mrb[89].mxu1  ;;  %v5603_v33 = vld [vmem:[%s7035_s13 + $0x154] ss:$8 sps:$4 sm:$0xff]   ;;  %v5610_v37 = vld [vmem:[%s7035_s13 + $0x1e0] ss:$8 sps:$4 sm:$0xff]  }
 0x936   : > { %v3191_v42 = vpop.f32.mrb[90].mxu1  ;;  %v5613_v40 = vld [vmem:[%s7035_s13 + $0x170] ss:$8 sps:$4 sm:$0xff]  }
 0x937   : > { %v3195_v43 = vpack.c.bf16 %v3194_v39, %v3194_v39  ;;  %v5123_v44 = vpop.f32.mrb[91].mxu1  ;;  %v5612_v39 = vld [vmem:[%s7035_s13 + $0x1e4] ss:$8 sps:$4 sm:$0xff]   ;;  %v5615_v42 = vld [vmem:[%s7035_s13 + $0x174] ss:$8 sps:$4 sm:$0xff]  }
 0x938   : > { %v5616_v44 = vld [vmem:[%s7035_s13 + $0x1f0] ss:$8 sps:$4 sm:$0xff]  }
 0x939   : > { %v6698_v45 = vsel %vm3201_vm1, %v3195_v43, 0  ;;  %v5618_v43 = vld [vmem:[%s7035_s13 + $0x1f4] ss:$8 sps:$4 sm:$0xff]  }
 0x93a   : > { %5125 = vmatpush3.bf16.msra.mxu1 %v6698_v45 }
 0x93b   : > { %5130 = vmatprep.subr.bf16.mxu1 %v5711_v0 }
 0x93d   : > { %5127 = vmatmul.mubr.msk.bf16.vlgmr.msra.gmra.mrb[92].mxu1 %vm3197_vm9, %v3196_v47 }
 0x93e   : > { %5131 = vmatpush3.bf16.msra.mxu1 %v6698_v45  ;;  %5132 = vmatprep.mubr.msk.bf16.mxu1 %vm5712_vm0, %v5711_v0 }
 0x93f   : > { %3405 = vmatprep.subr.bf16.mxu1 %v5531_v18 }
 0x945   : > { %5133 = vmatmul.mubr.msk.bf16.vlgmr.msra.gmra.mrb[96].mxu1 %vm3197_vm9, %v4673_v48 }
 0x946   : > { %3406 = vmatpush1.bf16.msra.mxu1 %v5529_v49  ;;  %3437 = vmatprep.mubr.bf16.mxu1 %v5713_v38 }
 0x947   : > { %3407 = vmatprep.subr.bf16.mxu1 %v5537_v51 }
 0x94a   : > { %3408 = vmatpush1.bf16.msra.mxu1 %v5535_v4 }
 0x94b   : > { %3409 = vmatprep.subr.bf16.mxu1 %v5543_v52 }
 0x94e   : > { %3410 = vmatpush1.bf16.msra.mxu1 %v5541_v25 }
 0x94f   : > { %3411 = vmatprep.subr.bf16.mxu1 %v5549_v53 }
 0x952   : > { %3412 = vmatpush1.bf16.msra.mxu1 %v5547_v54 }
 0x953   : > { %3413 = vmatprep.subr.bf16.mxu1 %v5555_v6 }
 0x956   : > { %3414 = vmatpush1.bf16.msra.mxu1 %v5553_v30 }
 0x957   : > { %3415 = vmatprep.subr.bf16.mxu1 %v5561_v56 }
 0x95a   : > { %3416 = vmatpush1.bf16.msra.mxu1 %v5559_v9 }
 0x95b   : > { %3417 = vmatprep.subr.bf16.mxu1 %v5567_v13 }
 0x95e   : > { %3418 = vmatpush1.bf16.msra.mxu1 %v5565_v14 }
 0x95f   : > { %3419 = vmatprep.subr.bf16.mxu1 %v5570_v46 }
 0x962   : > { %3420 = vmatpush1.bf16.msra.mxu1 %v5568_v41  ;;  %v5620_v41 = vld [vmem:[%s7038_s16] sm:$0xff]  }
 0x963   : > { %5136 = vmatprep.subr.bf16.mxu1 %v5711_v0 }
 0xa10   : > { %v3239_v50 = vpop.f32.mrb[92].mxu1 }
 0xa11   : > { %v3245_v55 = vpack.c.bf16 %v3239_v50, %v3239_v50  ;;  %v5128_v57 = vpop.f32.mrb[93].mxu1 }
 0xa12   : > { %v3242_v59 = vpop.f32.mrb[94].mxu1 }
 0xa13   : > { %3559 = vmatmul.mubr.bf16.vlgmr.msra.gmra.mrb[60].mxu0 %v3245_v55  ;;  %v5129_v60 = vpop.f32.mrb[95].mxu1  ;;  %v5621_v55 = vld [vmem:[%s7038_s16 + $0x48] sm:$0xff]  }
 0xa14   : > { %5143 = vmatpush3.bf16.msra.mxu0 %v6698_v45  ;;  %5144 = vmatprep.mubr.msk.bf16.mxu0 %vm5712_vm0, %v5711_v0  ;;  %v5622_v59 = vld [vmem:[%s7038_s16 + $0x8] sm:$0xff]   ;;  %v5623_v60 = vld [vmem:[%s7038_s16 + $0x50] sm:$0xff]  }
 0xa15   : > { %3896 = vmatprep.subr.bf16.mxu0 %v5576_v58 }
 0xa18   : > { %v3301_v61 = vpop.f32.mrb[96].mxu1 }
 0xa19   : > { %v3307_v63 = vpack.c.bf16 %v3301_v61, %v3301_v61  ;;  %v5134_v1 = vpop.f32.mrb[97].mxu1  ;;  %v5624_v61 = vld [vmem:[%s7038_s16 + $0x10] sm:$0xff]  }
 0xa1a   : > { %v3304_v5 = vpop.f32.mrb[98].mxu1  ;;  %v5627_v1 = vld [vmem:[%s7038_s16 + $0x60] sm:$0xff]  }
 0xa1b   : > { %3438 = vmatmul.mubr.bf16.vlgmr.msra.gmra.mrb[100].mxu1 %v3307_v63  ;;  %5145 = vmatmul.mubr.msk.bf16.vlgmr.msra.gmra.mrb[64].mxu0 %vm3197_vm9, %v4757_v62  ;;  %v5135_v8 = vpop.f32.mrb[99].mxu1  ;;  %v5625_v62 = vld [vmem:[%s7038_s16 + $0x58] sm:$0xff]   ;;  %v5630_v5 = vld [vmem:[%s7038_s16 + $0x28] sm:$0xff]  }
 0xa1c   : > { %5137 = vmatpush3.bf16.msra.mxu1 %v6698_v45  ;;  %5138 = vmatprep.mubr.msk.bf16.mxu1 %vm5712_vm0, %v5711_v0  ;;  %v5619_v45 = vld [vmem:[%s7038_s16 + $0x40] sm:$0xff]   ;;  %v5626_v63 = vld [vmem:[%s7038_s16 + $0x18] sm:$0xff]   ;;  %v5632_v8 = vld [vmem:[%s7038_s16 + $0x30] sm:$0xff]  }
 0xa1d   : > { %3710 = vmatprep.subr.bf16.mxu1 %v5573_v2  ;;  %3897 = vmatpush1.bf16.msra.mxu0 %v5574_v3  ;;  %v5628_v2 = vld [vmem:[%s7038_s16 + $0x20] sm:$0xff]   ;;  %v5629_v3 = vld [vmem:[%s7038_s16 + $0x68] sm:$0xff]  }
 0xa1e   : > { %3898 = vmatprep.subr.bf16.mxu0 %v5582_v7  ;;  %3928 = vmatprep.mubr.bf16.mxu0 %v5713_v38  ;;  %v5631_v7 = vld [vmem:[%s7038_s16 + $0x70] sm:$0xff]  }
 0xa21   : > { %3899 = vmatpush1.bf16.msra.mxu0 %v5580_v10  ;;  %v5633_v10 = vld [vmem:[%s7038_s16 + $0x78] sm:$0xff]  }
 0xa22   : > { %3900 = vmatprep.subr.bf16.mxu0 %v5588_v11  ;;  %v5634_v11 = vld [vmem:[%s7038_s16 + $0x38] sm:$0xff]  }
 0xa23   : > { %5139 = vmatmul.mubr.msk.bf16.vlgmr.msra.gmra.mrb[104].mxu1 %vm3197_vm9, %v4723_v12  ;;  %v5635_v12 = vld [vmem:[%s7040_s18] sm:$0xff]  }
 0xa24   : > { %3711 = vmatpush1.bf16.msra.mxu1 %v5571_v15  ;;  %3742 = vmatprep.mubr.bf16.mxu1 %v5713_v38  ;;  %v5583_v38 = vld [vmem:[%s7035_s13 + $0x120] ss:$8 sps:$4 sm:$0xff]  }
 0xa25   : > { %3712 = vmatprep.subr.bf16.mxu1 %v5579_v16  ;;  %3901 = vmatpush1.bf16.msra.mxu0 %v5586_v17  ;;  %v5636_v15 = vld [vmem:[%s7040_s18 + $0x8] sm:$0xff]   ;;  %v5637_v16 = vld [vmem:[%s7040_s18 + $0x10] sm:$0xff]   ;;  %v5638_v17 = vld [vmem:[%s7040_s18 + $0x18] sm:$0xff]  }
 0xa26   : > { %3902 = vmatprep.subr.bf16.mxu0 %v5594_v19  ;;  %v5639_v19 = vld [vmem:[%s7040_s18 + $0x20] sm:$0xff]  }
 0xa28   : > { %3713 = vmatpush1.bf16.msra.mxu1 %v5577_v20  ;;  %v3941_v20 = vlaneseq }
 0xa29   : > { %3714 = vmatprep.subr.bf16.mxu1 %v5585_v21  ;;  %3903 = vmatpush1.bf16.msra.mxu0 %v5592_v22 }
 0xa2a   : > { %3904 = vmatprep.subr.bf16.mxu0 %v5600_v23  ;;  %v3942_v22 = vshrl.u32 %v3941_v20, 7 }
 0xa2c   : > { %3715 = vmatpush1.bf16.msra.mxu1 %v5583_v38 }
 0xa2d   : > { %3716 = vmatprep.subr.bf16.mxu1 %v5591_v24  ;;  %3905 = vmatpush1.bf16.msra.mxu0 %v5598_v26  ;;  %v3943_v26 = vsub.s32 0, %v3942_v22 }
 0xa2e   : > { %3906 = vmatprep.subr.bf16.mxu0 %v5606_v27  ;;  %v3939_v27 = vld [vmem:[%s7037_s15] sm:$0x3] }
 0xa30   : > { %3717 = vmatpush1.bf16.msra.mxu1 %v5589_v28  ;;  %v3947_v28 = vsub.s32 1, %v3942_v22 }
 0xa31   : > { %3718 = vmatprep.subr.bf16.mxu1 %v5597_v29  ;;  %3907 = vmatpush1.bf16.msra.mxu0 %v5604_v31 }
 0xa32   : > { %3908 = vmatprep.subr.bf16.mxu0 %v5612_v39 }
 0xa34   : > { %3719 = vmatpush1.bf16.msra.mxu1 %v5595_v32 }
 0xa35   : > { %3720 = vmatprep.subr.bf16.mxu1 %v5603_v33  ;;  %3909 = vmatpush1.bf16.msra.mxu0 %v5610_v37  ;;  %v3944_v33 = vrot.slane %v3939_v27, %v3943_v26 }
 0xa36   : > { %3910 = vmatprep.subr.bf16.mxu0 %v5618_v43 }
 0xa38   : > { %3721 = vmatpush1.bf16.msra.mxu1 %v5601_v34 }
 0xa39   : > { %3722 = vmatprep.subr.bf16.mxu1 %v5609_v35  ;;  %3911 = vmatpush1.bf16.msra.mxu0 %v5616_v44  ;;  %v3948_v35 = vrot.slane %v3939_v27, %v3947_v28 }
 0xa3a   : > { %5148 = vmatprep.subr.bf16.mxu0 %v5711_v0 }
 0xa3c   : > { %3723 = vmatpush1.bf16.msra.mxu1 %v5607_v36 }
 0xa3d   : > { %3724 = vmatprep.subr.bf16.mxu1 %v5615_v42 }
 0xa40   : > { %3725 = vmatpush1.bf16.msra.mxu1 %v5613_v40 }
 0xa41   : > { %4901 = vmatprep.subr.bf16.mxu1 %v5619_v45 }
 0xae6   : > { %v3560_v47 = vpop.f32.mrb[60].mxu0 }
 0xae7   : > { %v3562_v18 = vpop.f32.mrb[61].mxu0 }
 0xae8   : > { %v3564_v48 = vpop.f32.mrb[62].mxu0 }
 0xae9   : > { %v3565_v49 = vpop.f32.mrb[63].mxu0 }
 0xaee   : > { %v3439_v51 = vpop.f32.mrb[100].mxu1  ;;  %v3792_v4 = vpop.f32.mrb[64].mxu0 }
 0xaef   : > { %v3441_v52 = vpop.f32.mrb[101].mxu1  ;;  %v6879_v25 = vadd.f32 %v3560_v47, %v3439_v51  ;;  %v3798_v53 = vpack.c.bf16 %v3792_v4, %v3792_v4  ;;  %v5146_v54 = vpop.f32.mrb[65].mxu0  ;;  %v5640_v51 = vld [vmem:[%s7040_s18 + $0x28] sm:$0xff]   ;;  %v5641_v4 = vld [vmem:[%s7040_s18 + $0x30] sm:$0xff]  }
 0xaf0   : > { %v3443_v6 = vpop.f32.mrb[102].mxu1  ;;  %v6881_v30 = vadd.f32 %v3562_v18, %v3441_v52  ;;  %v3795_v56 = vpop.f32.mrb[66].mxu0  ;;  %v5642_v52 = vld [vmem:[%s7040_s18 + $0x38] sm:$0xff]  }
 0xaf1   : > { %v3444_v9 = vpop.f32.mrb[103].mxu1  ;;  %3929 = vmatmul.mubr.bf16.vlgmr.msra.gmra.mrb[68].mxu0 %v3798_v53  ;;  %v5147_v13 = vpop.f32.mrb[67].mxu0  ;;  %v4791_v53 = vld [vmem:[%s7039_s17] ss:$0 sm:$0xff] }
 0xaf2   : > { %5164 = vmatprep.mubr.msk.bf16.mxu0 %vm5712_vm0, %v5711_v0  ;;  %5149 = vmatpush3.bf16.msra.mxu0 %v5635_v12 }
 0xaf3   : > { %5150 = vmatprep.subr.bf16.mxu0 %v5711_v0 }
 0xaf6   : > { %v3606_v14 = vpop.f32.mrb[104].mxu1  ;;  %5151 = vmatpush3.bf16.msra.mxu0 %v5636_v15 }
 0xaf7   : > { %v3612_v46 = vpack.c.bf16 %v3606_v14, %v3606_v14  ;;  %v5140_v50 = vpop.f32.mrb[105].mxu1  ;;  %5152 = vmatprep.subr.bf16.mxu0 %v5711_v0 }
 0xaf8   : > { %v3609_v57 = vpop.f32.mrb[106].mxu1 }
 0xaf9   : > { %3743 = vmatmul.mubr.bf16.vlgmr.msra.gmra.mrb[108].mxu1 %v3612_v46  ;;  %v5141_v58 = vpop.f32.mrb[107].mxu1 }
 0xafa   : > { %4902 = vmatpush3.bf16.msra.mxu1 %v5620_v41  ;;  %5153 = vmatpush3.bf16.msra.mxu0 %v5637_v16 }
 0xafb   : > { %4903 = vmatprep.subr.bf16.mxu1 %v5621_v55  ;;  %5154 = vmatprep.subr.bf16.mxu0 %v5711_v0 }
 0xafe   : > { %4904 = vmatpush3.bf16.msra.mxu1 %v5622_v59  ;;  %5155 = vmatpush3.bf16.msra.mxu0 %v5638_v17 }
 0xaff   : > { %4905 = vmatprep.subr.bf16.mxu1 %v5623_v60  ;;  %5156 = vmatprep.subr.bf16.mxu0 %v5711_v0 }
 0xb02   : > { %4906 = vmatpush3.bf16.msra.mxu1 %v5624_v61  ;;  %5157 = vmatpush3.bf16.msra.mxu0 %v5639_v19 }
 0xb03   : > { %4907 = vmatprep.subr.bf16.mxu1 %v5625_v62  ;;  %5158 = vmatprep.subr.bf16.mxu0 %v5711_v0 }
 0xb06   : > { %4908 = vmatpush3.bf16.msra.mxu1 %v5626_v63  ;;  %5159 = vmatpush3.bf16.msra.mxu0 %v5640_v51 }
 0xb07   : > { %4909 = vmatprep.subr.bf16.mxu1 %v5627_v1  ;;  %5160 = vmatprep.subr.bf16.mxu0 %v5711_v0 }
 0xb0a   : > { %4910 = vmatpush3.bf16.msra.mxu1 %v5628_v2  ;;  %5161 = vmatpush3.bf16.msra.mxu0 %v5641_v4 }
 0xb0b   : > { %4911 = vmatprep.subr.bf16.mxu1 %v5629_v3  ;;  %5162 = vmatprep.subr.bf16.mxu0 %v5711_v0  ;;  %v4808_v0 = vld [vmem:[%s7041_s19] ss:$0 sm:$0xff] }
 0xb0e   : > { %4912 = vmatpush3.bf16.msra.mxu1 %v5630_v5  ;;  %5163 = vmatpush3.bf16.msra.mxu0 %v5642_v52 }
 0xb0f   : > { %4913 = vmatprep.subr.bf16.mxu1 %v5631_v7 }
 0xb12   : > { %4914 = vmatpush3.bf16.msra.mxu1 %v5632_v8 }
 0xb13   : > { %4915 = vmatprep.subr.bf16.mxu1 %v5633_v10 }
 0xb16   : > { %4916 = vmatpush3.bf16.msra.mxu1 %v5634_v11 }
 0xbc4   : > { %v3930_v21 = vpop.f32.mrb[68].mxu0 }
 0xbc5   : > { %v3932_v23 = vpop.f32.mrb[69].mxu0 }
 0xbc6   : > { %v3934_v38 = vpop.f32.mrb[70].mxu0 }
 0xbc7   : > { %v3935_v24 = vpop.f32.mrb[71].mxu0 }
 0xbcc   : > { %v3744_v29 = vpop.f32.mrb[108].mxu1 }
 0xbcd   : > { %v3751_v31 = vadd.f32 %v3744_v29, %v6879_v25  ;;  %v3746_v32 = vpop.f32.mrb[109].mxu1 }
 0xbce   : > { %v3752_v34 = vadd.f32 %v3746_v32, %v6881_v30  ;;  %v3748_v36 = vpop.f32.mrb[110].mxu1 }
 0xbcf   : > { %v3937_v37 = vadd.f32 %v3930_v21, %v3751_v31  ;;  %v3749_v39 = vpop.f32.mrb[111].mxu1 }
 0xbd0   : > { %v3938_v40 = vadd.f32 %v3932_v23, %v3752_v34 }
 0xbd1   : > { %v3951_v42 = vadd.f32 %v3944_v33, %v3937_v37 }
 0xbd2   : > { %v3952_v43 = vadd.f32 %v3948_v35, %v3938_v40 }
 0xbd3   : > { %vm3953_vm0 = vcmp.ge.f32.partialorder %v3951_v42, 0.0  ;;  %v3955_v44 = vmul.f32 0.01, %v3951_v42 }
 0xbd4   : > { %v3956_v45 = vmul.f32 0.01, %v3952_v43  ;;  %vm3954_vm10 = vcmp.ge.f32.partialorder %v3952_v43, 0.0 }
 0xbd5   : > { %v3957_v47 = vsel %vm3953_vm0, %v3951_v42, %v3955_v44 }
 0xbd6   : > { %v3958_v18 = vsel %vm3954_vm10, %v3952_v43, %v3956_v45  ;;  %v3959_v49 = vpack.c.bf16 %v3957_v47, %v3957_v47 }
 0xbd7   : > { %v3960_v48 = vpack.c.bf16 %v3958_v18, %v3958_v18 }
 0xbd9   : > { %4128 = vmatprep.mubr.bf16.mxu1 %v3960_v48 }
 0xbda   : > { %4129 = vmatmul.mubr.bf16.vlgmr.msra.gmra.mrb[112].mxu1 %v3959_v49 }
 0xcad   : > { %v4917_v25 = vpop.f32.mrb[112].mxu1 }
 0xcae   : > { %v4918_v54 = vpop.f32.mrb[113].mxu1 }
 0xcaf   : > { %v4919_v6 = vadd.f32 %v4918_v54, %v4917_v25  ;;  %v4920_v30 = vpop.f32.mrb[114].mxu1 }
 0xcb0   : > { %v4921_v56 = vpop.f32.mrb[115].mxu1 }
 0xcb1   : > { %v4131_v9 = vadd.f32 %v4919_v6, %v4791_v53 }
 0xcb3   : > { %vm4136_vm11 = vcmp.ge.f32.partialorder %v4131_v9, 0.0  ;;  %v4137_v13 = vmul.f32 0.01, %v4131_v9 }
 0xcb5   : > { %v4138_v14 = vsel %vm4136_vm11, %v4131_v9, %v4137_v13 }
 0xcb6   : > { %v4139_v41 = vpack.c.bf16 %v4138_v14, %v4138_v14 }
 0xcb8   : > { %5165 = vmatmul.mubr.bf16.vlgmr.msra.gmra.mrb[72].mxu0 %v4139_v41 }
 0xd8b   : > { %v4245_v46 = vpop.f32.mrb[72].mxu0 }
 0xd8c   : > { %v4246_v50 = vadd.f32 %v4808_v0, %v4245_v46  ;;  %v5166_v55 = vpop.f32.mrb[73].mxu0 }
 0xd8d   : > { %v4248_v57 = vpop.f32.mrb[74].mxu0 }
 0xd8e   : > { %v5167_v58 = vpop.f32.mrb[75].mxu0  ;;  %v4252_v59 = vsel %vm4251_vm12, %v4246_v50, -inf }
 0xd8f   : > { %4253 = vmax.xlane.f32.xlu0 %v4252_v59 }
 0xe1c   : > { %v4254_v60 = vpop.xlane.xlu0 %4253 }
 0xe1d   : > { %v4255_v61 = vsub.f32 %v4246_v50, %v4254_v60 }
 0xe1f   : > { %v4256_v62 = vmul.f32 1.442695, %v4255_v61 }
 0xe21   : > { %5643 = vpow2.f32 %v4256_v62 }
 0xe2b   : > { %v5644_v63 = vpop.eup %5643 }
 0xe2c   : > { %v4258_v1 = vsel %vm4251_vm12, %v5644_v63, 0.0 }
 0xe2d   : > { %4259 = vadd.xlane.f32.xlu0 %v4258_v1 }
 0xeba   : > { %v4260_v2 = vpop.xlane.xlu0 %4259 }
 0xebb   : > { %5645 = vrcp.f32 %v4260_v2 }
 0xec5   : > { %v5646_v3 = vpop.eup %5645 }
 0xec6   : > { %v4262_v5 = vmul.f32 %v5646_v3, %v4260_v2 }
 0xec8   : > { %v4263_v7 = vsub.f32 2.0, %v4262_v5 }
 0xeca   : > { %v4264_v8 = vmul.f32 %v5646_v3, %v4263_v7 }
 0xecc   : > { %v4265_v10 = vmul.f32 %v5644_v63, %v4264_v8 }
 0xece   : > { %4266 = vst.msk [vmem:[%s622_s25] sm:$0x3] %vm4251_vm12, %v4265_v10 }
 0xecf   : > { %5660 = shalt.err (!%p5657_p3)
}
 0xed0   : > { %s5661_s23 = scalar_lea.hbm %s6979_s1, 32  ;;  %s5665_s29 = scalar_lea.hbm %s7042_s20, 64 }
 0xed1   : > { %p5662_p4 = scmp.ne.s32.totalorder %s6979_s1, %s5661_s23  ;;  %p5666_p9 = scmp.lt.u32.totalorder %s6979_s1, %s7042_s20 }
 0xed2   : > { %p5667_p10 = scmp.lt.u32.totalorder %s5665_s29, %s5661_s23  ;;  %p5669_p12 = scmp.lt.u32.totalorder %s5661_s23, %s6979_s1 }
 0xed3   : > { %p5663_p7 = pnand %p5662_p4, %p5858_p5 }
 0xed4   : > { %p5668_p11 = por %p5667_p10, %p5666_p9 }
 0xed5   : > { %p5664_p8 = pneg %p5663_p7 }
 0xed6   : > { %p5670_p13 = por %p5669_p12, %p5668_p11 }
 0xed8   : > { %p5671_p0 = pnand %p5670_p13, %p5664_p8 }
 0xeda   : > { %5674 = shalt.err (!%p5671_p0)
}
 0xedb   : > { %5253 = dma.vmem_to_hbm [thread:$0]  (%p5858_p5), %s6981_s3, 32, %s6979_s1, %s4268_s24  }
 0xedc PF: > { %s7074_s5 = sld [smem:[#allocation7_spill]]  ;;  %s7075_s0 = sld [smem:[#allocation5_spill]] }
 0xee2   : > { %p5259_p1 = scmp.ge.s32.totalorder %s7074_s5, 2  ;;  %s4293_s21 = sand.u32 1, %s7075_s0  }
 0xee3   : > { %s4294_s25 = scalar_lea.sflag [#allocation3], %s4293_s21 }
 0xee4   : > { %p5256_p2 = pnand %p5259_p1, %p5862_p6 }
 0xee6   : > { %5692 = dma.done.wait (!%p5256_p2), %s4294_s25, 32  }
 0xee7   : > { %5694 = vsyncadd (!%p5256_p2), %s4294_s25, 4294967264  ;;  %s7077_s24 = sld [smem:[#allocation8_spill]]  ;;  %s7078_s23 = sld [smem:[#allocation6_spill]] }
 0xee8   : > { %s7079_s29 = sld [smem:[#allocation9_spill]]  ;;  %s7080_s1 = smov %s5701_s22 }
 0xeed   : > { %p30_p3 = scmp.ge.s32.totalorder %s7077_s24, 4   ;;  %s7081_s22 = smov %s7078_s23 }
 0xeee   : > { %s7082_s23 = smov %s7079_s29 }
 0xeef   :  { %32 = sbr.rel (!%p30_p3) target bundleno = 10 (0xa), region = 153 }
 0xef6   :  { %4299 = vsyncpa [#allocation3], 1 }
 0xef7   :  { %4301 = vsyncpa [#allocation3 + $0x1], 1 }

</bundles_post_ra>
